<compile_context>
chip_gen: v7x
topology: tpu7x:2x2x1
jax: 0.10.0
libtpu: 0.0.40
codegen_flags: <defaults>
</compile_context>

<pallas_src>
import functools

import jax
import jax.numpy as jnp
import numpy as np
from jax.experimental import pallas as pl
from jax.experimental.pallas import tpu as pltpu

ALPHA = 0.5          # args.restart_alpha
LANE = 128           # TPU lane width; pad every matmul dim to this


def equiv_diffusion_kernel(x_ref, vcol_ref, vrow_ref, ecol_ref, erow_ref,
                           w11_ref, b11_ref, w12_ref, b12_ref,
                           w21x_ref, w21e_ref, b21_ref, w22_ref, b22_ref,
                           out_ref, *, m_pad):
    f32 = jnp.float32
    bf16 = jnp.bfloat16

    n_pad = x_ref.shape[0]
    e_pad = vcol_ref.shape[0]
    h_pad = w11_ref.shape[1]

    X = x_ref[...]                      # [N, F] f32 (residual path stays f32)
    Xb = X.astype(bf16)

    # ---- hoisted node-space MLPs (run on N rows, not E rows) -----------------
    h1 = jnp.maximum(
        jnp.dot(Xb, w11_ref[...], preferred_element_type=f32) + b11_ref[...], 0.0)
    A = jnp.dot(h1.astype(bf16), w12_ref[...],
                preferred_element_type=f32) + b12_ref[...]          # W1(X)         [N, H]
    Yx = jnp.dot(Xb, w21x_ref[...],
                 preferred_element_type=f32) + b21_ref[...]         # X@w21x + b21  [N, H]
    AY = jnp.concatenate([A, Yx], axis=-1).astype(bf16)             # [N, 2H] one gather fetches both

    # ---- incidence masks built in-kernel from index vectors (exact 0/1) ------
    vcol = vcol_ref[...]                # [E, 1] int32 (padded pairs = -1)
    vrow = vrow_ref[...]                # [1, E]
    ecol = ecol_ref[...]                # [E, 1]
    erow = erow_ref[...]                # [1, E]

    iota_n_lane = jax.lax.broadcasted_iota(jnp.int32, (e_pad, n_pad), 1)
    iota_m_lane = jax.lax.broadcasted_iota(jnp.int32, (e_pad, m_pad), 1)
    iota_n_sub = jax.lax.broadcasted_iota(jnp.int32, (n_pad, e_pad), 0)
    iota_m_sub = jax.lax.broadcasted_iota(jnp.int32, (m_pad, e_pad), 0)

    Gv = jnp.where(vcol == iota_n_lane, 1.0, 0.0).astype(bf16)      # [E, N] gather from nodes
    Ge = jnp.where(ecol == iota_m_lane, 1.0, 0.0).astype(bf16)      # [E, M] gather from edges
    SvT_f = jnp.where(iota_n_sub == vrow, 1.0, 0.0)                 # [N, E] scatter to nodes (f32)
    SeT_f = jnp.where(iota_m_sub == erow, 1.0, 0.0)                 # [M, E] scatter to edges (f32)

    deg_v = jnp.sum(SvT_f, axis=1, keepdims=True)                   # [N, 1] exact counts, f32
    deg_e = jnp.sum(SeT_f, axis=1, keepdims=True)                   # [M, 1]
    SvT = SvT_f.astype(bf16)
    SeT = SeT_f.astype(bf16)

    # ---- gather both hoisted node features with a single matmul --------------
    G_AY = jnp.dot(Gv, AY, preferred_element_type=f32)              # [E, 2H]
    Xve = G_AY[:, :h_pad]              # W1(X)[vertex]
    Yx_g = G_AY[:, h_pad:]             # (X@w21x + b21)[vertex]

    # ---- Xe = scatter_mean(Xve, edges): exact 0/1 matmul + f32 1/count -------
    Xe = jnp.dot(SeT, Xve.astype(bf16), preferred_element_type=f32)
    Xe = Xe * (1.0 / jnp.maximum(deg_e, 1.0))                       # [M, H]

    # ---- hoist w21e to edge (M-row) space, then gather per pair --------------
    Ye = jnp.dot(Xe.astype(bf16), w21e_ref[...], preferred_element_type=f32)   # [M, H]
    Ye_g = jnp.dot(Ge, Ye.astype(bf16), preferred_element_type=f32)            # [E, H]

    # ---- W2 second layer on incidence pairs ----------------------------------
    h2 = jnp.maximum(Yx_g + Ye_g, 0.0)
    Xout = jnp.dot(h2.astype(bf16), w22_ref[...],
                   preferred_element_type=f32) + b22_ref[...]       # [E, C]

    # ---- Xv = scatter_mean(Xout, vertex, dim_size=N) --------------------------
    Xv = jnp.dot(SvT, Xout.astype(bf16), preferred_element_type=f32)
    Xv = Xv * (1.0 / jnp.maximum(deg_v, 1.0))                       # [N, C]

    # ---- restart residual (f32 on the VPU) ------------------------------------
    out_ref[...] = (1.0 - ALPHA) * Xv + ALPHA * X


def _round_up(x, m):
    return ((x + m - 1) // m) * m


def _pad2(a, rows, cols):
    return jnp.pad(a, ((0, rows - a.shape[0]), (0, cols - a.shape[1])))


def equiv_diffusion(X, vertex, edges, num_hyperedges, params):
    """Pad to lane-dense tiles and run one VMEM-resident Pallas kernel."""
    N, F = X.shape
    E = int(vertex.shape[0])
    M = int(num_hyperedges)
    w11, b11, w12, b12, w21x, w21e, b21, w22, b22 = params
    H = w11.shape[1]
    C = w22.shape[1]
    assert C == F, "restart residual (1-alpha)*Xv + alpha*X0 requires num_classes == num_features"

    Np, Fp, Hp, Cp = (_round_up(d, LANE) for d in (N, F, H, C))
    Mp, Ep = _round_up(M, LANE), _round_up(E, LANE)

    bf16, f32 = jnp.bfloat16, jnp.float32

    X_p = _pad2(X.astype(f32), Np, Fp)

    # index vectors; padded incidence pairs get -1 so they match no node/edge
    def pad_idx(idx):
        full = jnp.full((Ep,), -1, jnp.int32).at[:E].set(idx.astype(jnp.int32))
        return full.reshape(Ep, 1), full.reshape(1, Ep)

    vcol, vrow = pad_idx(vertex)
    ecol, erow = pad_idx(edges)

    # weights as bf16 MXU operands, biases as f32 (added on the VPU post-matmul)
    w11_p = _pad2(w11, Fp, Hp).astype(bf16)
    w12_p = _pad2(w12, Hp, Hp).astype(bf16)
    w21x_p = _pad2(w21x, Fp, Hp).astype(bf16)
    w21e_p = _pad2(w21e, Hp, Hp).astype(bf16)
    w22_p = _pad2(w22, Hp, Cp).astype(bf16)
    b11_p = _pad2(b11, 1, Hp).astype(f32)
    b12_p = _pad2(b12, 1, Hp).astype(f32)
    b21_p = _pad2(b21, 1, Hp).astype(f32)
    b22_p = _pad2(b22, 1, Cp).astype(f32)

    inputs = [X_p, vcol, vrow, ecol, erow,
              w11_p, b11_p, w12_p, b12_p,
              w21x_p, w21e_p, b21_p, w22_p, b22_p]

    # advisory cost hint so XLA schedules neighbouring ops around the custom call
    flops = 2 * (Np * Fp * Hp + Np * Hp * Hp + Np * Fp * Hp
                 + Ep * Np * 2 * Hp + Mp * Ep * Hp + Mp * Hp * Hp
                 + Ep * Mp * Hp + Ep * Hp * Cp + Np * Ep * Cp)
    bytes_accessed = (4 * Np * Fp + 4 * Np * Cp + 4 * 4 * Ep
                      + 2 * (2 * Fp * Hp + 2 * Hp * Hp + Hp * Cp)
                      + 4 * (3 * Hp + Cp))
    cost = pl.CostEstimate(flops=int(flops), transcendentals=0,
                           bytes_accessed=int(bytes_accessed))

    def full_spec(a):
        return pl.BlockSpec(a.shape, lambda i: (0, 0))

    out = pl.pallas_call(
        functools.partial(equiv_diffusion_kernel, m_pad=Mp),
        grid=(1,),   # toy sizes: single VMEM-resident tile (see TODO at top for real sizes)
        out_shape=jax.ShapeDtypeStruct((Np, Cp), f32),
        in_specs=[full_spec(a) for a in inputs],
        out_specs=pl.BlockSpec((Np, Cp), lambda i: (0, 0)),
        compiler_params=pltpu.CompilerParams(
            dimension_semantics=("arbitrary",),
            vmem_limit_bytes=32 * 1024 * 1024),   # fits v5e/v6e and v7x's 64 MiB VMEM
        cost_estimate=cost,
    )(*inputs)

    return out[:N, :C]


def reference(X, vertex, edges, M, params, alpha):
    """Pure-JAX f32 reference mirroring the PyTorch forward (eval mode)."""
    w11, b11, w12, b12, w21x, w21e, b21, w22, b22 = params
    N = X.shape[0]
    Xg = X[vertex]
    h1 = jax.nn.relu(Xg @ w11 + b11)
    Xve = h1 @ w12 + b12
    s = jax.ops.segment_sum(Xve, edges, num_segments=M)
    c = jnp.maximum(jax.ops.segment_sum(jnp.ones((Xve.shape[0],)), edges, num_segments=M), 1.0)
    Xe = s / c[:, None]
    Xev = Xe[edges]
    h2 = jax.nn.relu(Xg @ w21x + Xev @ w21e + b21)
    Xout_e = h2 @ w22 + b22
    sv = jax.ops.segment_sum(Xout_e, vertex, num_segments=N)
    cv = jnp.maximum(jax.ops.segment_sum(jnp.ones((Xout_e.shape[0],)), vertex, num_segments=N), 1.0)
    Xv = sv / cv[:, None]
    return (1.0 - alpha) * Xv + alpha * X


if __name__ == "__main__":
    # small shapes: N nodes, F features, H hidden, M hyperedges, E incidence pairs
    N, F, H, M, E = 32, 16, 32, 16, 64
    C = F  # num_classes == num_features so the restart residual is well-defined

    key = jax.random.PRNGKey(0)
    ks = jax.random.split(key, 8)
    X = jax.random.normal(ks[0], (N, F), jnp.float32)
    vertex = jax.random.randint(ks[1], (E,), 0, N)
    edges = jax.random.randint(ks[2], (E,), 0, M)

    def init_linear(k, fan_in, fan_out):
        bound = 1.0 / np.sqrt(fan_in)
        kw, kb = jax.random.split(k)
        w = jax.random.uniform(kw, (fan_in, fan_out), jnp.float32, -bound, bound)
        b = jax.random.uniform(kb, (1, fan_out), jnp.float32, -bound, bound)
        return w, b

    # W1: MLP(F -> H -> H), 2 layers
    w11, b11 = init_linear(ks[3], F, H)
    w12, b12 = init_linear(ks[4], H, H)
    # W2: MLP(F+H -> H -> C), 2 layers; first weight split for the concat
    w21_full, b21 = init_linear(ks[5], F + H, H)
    w21x, w21e = w21_full[:F], w21_full[F:]
    w22, b22 = init_linear(ks[6], H, C)
    params = (w11, b11, w12, b12, w21x, w21e, b21, w22, b22)

    out = jax.block_until_ready(equiv_diffusion(X, vertex, edges, M, params))
    ref = reference(X, vertex, edges, M, params, ALPHA)

    assert out.shape == (N, C)
    # bf16 MXU operands -> compare against the f32 reference at bf16-level tolerance
    assert np.allclose(np.asarray(out), np.asarray(ref), atol=5e-2, rtol=5e-2), \
        f"mismatch vs reference, max abs err {np.max(np.abs(np.asarray(out) - np.asarray(ref)))}"
    print("KERNEL_OK")
</pallas_src>

<mosaic_0001>
module attributes {stable_mosaic.version = 11 : i64} {
  func.func @equiv_diffusion_kernel(%arg0: i32, %arg1: memref<128x128xf32, #tpu.memory_space<vmem>>, %arg2: memref<128x1xi32, #tpu.memory_space<vmem>>, %arg3: memref<1x128xi32, #tpu.memory_space<vmem>>, %arg4: memref<128x1xi32, #tpu.memory_space<vmem>>, %arg5: memref<1x128xi32, #tpu.memory_space<vmem>>, %arg6: memref<128x128xbf16, #tpu.memory_space<vmem>>, %arg7: memref<1x128xf32, #tpu.memory_space<vmem>>, %arg8: memref<128x128xbf16, #tpu.memory_space<vmem>>, %arg9: memref<1x128xf32, #tpu.memory_space<vmem>>, %arg10: memref<128x128xbf16, #tpu.memory_space<vmem>>, %arg11: memref<128x128xbf16, #tpu.memory_space<vmem>>, %arg12: memref<1x128xf32, #tpu.memory_space<vmem>>, %arg13: memref<128x128xbf16, #tpu.memory_space<vmem>>, %arg14: memref<1x128xf32, #tpu.memory_space<vmem>>, %arg15: memref<128x128xf32, #tpu.memory_space<vmem>>) attributes {dimension_semantics = [#tpu.dimension_semantics<arbitrary>], iteration_bounds = array<i64: 1>, scalar_prefetch = 0 : i64, scratch_operands = 0 : i64, tpu.core_type = #tpu.core_type<tc>, window_params = [{pipeline_mode = #tpu.pipeline_mode<synchronous>, transform_indices = @transform_0, window_bounds = array<i64: 128, 128>}, {pipeline_mode = #tpu.pipeline_mode<synchronous>, transform_indices = @transform_1, window_bounds = array<i64: 128, 1>}, {pipeline_mode = #tpu.pipeline_mode<synchronous>, transform_indices = @transform_2, window_bounds = array<i64: 1, 128>}, {pipeline_mode = #tpu.pipeline_mode<synchronous>, transform_indices = @transform_3, window_bounds = array<i64: 128, 1>}, {pipeline_mode = #tpu.pipeline_mode<synchronous>, transform_indices = @transform_4, window_bounds = array<i64: 1, 128>}, {pipeline_mode = #tpu.pipeline_mode<synchronous>, transform_indices = @transform_5, window_bounds = array<i64: 128, 128>}, {pipeline_mode = #tpu.pipeline_mode<synchronous>, transform_indices = @transform_6, window_bounds = array<i64: 1, 128>}, {pipeline_mode = #tpu.pipeline_mode<synchronous>, transform_indices = @transform_7, window_bounds = array<i64: 128, 128>}, {pipeline_mode = #tpu.pipeline_mode<synchronous>, transform_indices = @transform_8, window_bounds = array<i64: 1, 128>}, {pipeline_mode = #tpu.pipeline_mode<synchronous>, transform_indices = @transform_9, window_bounds = array<i64: 128, 128>}, {pipeline_mode = #tpu.pipeline_mode<synchronous>, transform_indices = @transform_10, window_bounds = array<i64: 128, 128>}, {pipeline_mode = #tpu.pipeline_mode<synchronous>, transform_indices = @transform_11, window_bounds = array<i64: 1, 128>}, {pipeline_mode = #tpu.pipeline_mode<synchronous>, transform_indices = @transform_12, window_bounds = array<i64: 128, 128>}, {pipeline_mode = #tpu.pipeline_mode<synchronous>, transform_indices = @transform_13, window_bounds = array<i64: 1, 128>}, {pipeline_mode = #tpu.pipeline_mode<synchronous>, transform_indices = @transform_14, window_bounds = array<i64: 128, 128>}]} {
    %c0 = arith.constant 0 : index
    %c0_0 = arith.constant 0 : index
    %0 = vector.load %arg1[%c0, %c0_0] : memref<128x128xf32, #tpu.memory_space<vmem>>, vector<128x128xf32>
    %1 = arith.truncf %0 : vector<128x128xf32> to vector<128x128xbf16>
    %c0_1 = arith.constant 0 : index
    %c0_2 = arith.constant 0 : index
    %2 = vector.load %arg6[%c0_1, %c0_2] : memref<128x128xbf16, #tpu.memory_space<vmem>>, vector<128x128xbf16>
    %cst = arith.constant dense<0.000000e+00> : vector<128x128xf32>
    %3 = tpu.matmul %1, %2, %cst {dimension_numbers = #tpu.dot_dimension_numbers<[1], [0], [0], [1], [0, 0, 1, 1], [], []>} : vector<128x128xbf16>, vector<128x128xbf16>, vector<128x128xf32> -> vector<128x128xf32>
    %c0_3 = arith.constant 0 : index
    %c0_4 = arith.constant 0 : index
    %4 = vector.load %arg7[%c0_3, %c0_4] : memref<1x128xf32, #tpu.memory_space<vmem>>, vector<1x128xf32>
    %5 = vector.broadcast %4 : vector<1x128xf32> to vector<128x128xf32>
    %6 = arith.addf %3, %5 : vector<128x128xf32>
    %cst_5 = arith.constant 0.000000e+00 : f32
    %7 = vector.broadcast %cst_5 : f32 to vector<128x128xf32>
    %8 = arith.maximumf %6, %7 : vector<128x128xf32>
    %9 = arith.truncf %8 : vector<128x128xf32> to vector<128x128xbf16>
    %c0_6 = arith.constant 0 : index
    %c0_7 = arith.constant 0 : index
    %10 = vector.load %arg8[%c0_6, %c0_7] : memref<128x128xbf16, #tpu.memory_space<vmem>>, vector<128x128xbf16>
    %cst_8 = arith.constant dense<0.000000e+00> : vector<128x128xf32>
    %11 = tpu.matmul %9, %10, %cst_8 {dimension_numbers = #tpu.dot_dimension_numbers<[1], [0], [0], [1], [0, 0, 1, 1], [], []>} : vector<128x128xbf16>, vector<128x128xbf16>, vector<128x128xf32> -> vector<128x128xf32>
    %c0_9 = arith.constant 0 : index
    %c0_10 = arith.constant 0 : index
    %12 = vector.load %arg9[%c0_9, %c0_10] : memref<1x128xf32, #tpu.memory_space<vmem>>, vector<1x128xf32>
    %13 = vector.broadcast %12 : vector<1x128xf32> to vector<128x128xf32>
    %14 = arith.addf %11, %13 : vector<128x128xf32>
    %c0_11 = arith.constant 0 : index
    %c0_12 = arith.constant 0 : index
    %15 = vector.load %arg10[%c0_11, %c0_12] : memref<128x128xbf16, #tpu.memory_space<vmem>>, vector<128x128xbf16>
    %cst_13 = arith.constant dense<0.000000e+00> : vector<128x128xf32>
    %16 = tpu.matmul %1, %15, %cst_13 {dimension_numbers = #tpu.dot_dimension_numbers<[1], [0], [0], [1], [0, 0, 1, 1], [], []>} : vector<128x128xbf16>, vector<128x128xbf16>, vector<128x128xf32> -> vector<128x128xf32>
    %c0_14 = arith.constant 0 : index
    %c0_15 = arith.constant 0 : index
    %17 = vector.load %arg12[%c0_14, %c0_15] : memref<1x128xf32, #tpu.memory_space<vmem>>, vector<1x128xf32>
    %18 = vector.broadcast %17 : vector<1x128xf32> to vector<128x128xf32>
    %19 = arith.addf %16, %18 : vector<128x128xf32>
    %20 = tpu.concatenate %14, %19 in 1 : vector<128x128xf32>, vector<128x128xf32> -> vector<128x256xf32>
    %21 = arith.truncf %20 : vector<128x256xf32> to vector<128x256xbf16>
    %c0_16 = arith.constant 0 : index
    %c0_17 = arith.constant 0 : index
    %22 = vector.load %arg2[%c0_16, %c0_17] : memref<128x1xi32, #tpu.memory_space<vmem>>, vector<128x1xi32>
    %c0_18 = arith.constant 0 : index
    %c0_19 = arith.constant 0 : index
    %23 = vector.load %arg3[%c0_18, %c0_19] : memref<1x128xi32, #tpu.memory_space<vmem>>, vector<1x128xi32>
    %c0_20 = arith.constant 0 : index
    %c0_21 = arith.constant 0 : index
    %24 = vector.load %arg4[%c0_20, %c0_21] : memref<128x1xi32, #tpu.memory_space<vmem>>, vector<128x1xi32>
    %c0_22 = arith.constant 0 : index
    %c0_23 = arith.constant 0 : index
    %25 = vector.load %arg5[%c0_22, %c0_23] : memref<1x128xi32, #tpu.memory_space<vmem>>, vector<1x128xi32>
    %26 = tpu.iota {dimensions = array<i32: 1>} : vector<128x128xi32>
    %27 = tpu.iota {dimensions = array<i32: 1>} : vector<128x128xi32>
    %28 = tpu.iota {dimensions = array<i32: 0>} : vector<128x128xi32>
    %29 = tpu.iota {dimensions = array<i32: 0>} : vector<128x128xi32>
    %30 = vector.broadcast %22 : vector<128x1xi32> to vector<128x128xi32>
    %31 = arith.cmpi eq, %30, %26 : vector<128x128xi32>
    %cst_24 = arith.constant 1.000000e+00 : f32
    %cst_25 = arith.constant 0.000000e+00 : f32
    %32 = vector.broadcast %cst_24 : f32 to vector<128x128xf32>
    %33 = vector.broadcast %cst_25 : f32 to vector<128x128xf32>
    %34 = arith.select %31, %32, %33 : vector<128x128xi1>, vector<128x128xf32>
    %35 = arith.truncf %34 : vector<128x128xf32> to vector<128x128xbf16>
    %36 = vector.broadcast %24 : vector<128x1xi32> to vector<128x128xi32>
    %37 = arith.cmpi eq, %36, %27 : vector<128x128xi32>
    %cst_26 = arith.constant 1.000000e+00 : f32
    %cst_27 = arith.constant 0.000000e+00 : f32
    %38 = vector.broadcast %cst_26 : f32 to vector<128x128xf32>
    %39 = vector.broadcast %cst_27 : f32 to vector<128x128xf32>
    %40 = arith.select %37, %38, %39 : vector<128x128xi1>, vector<128x128xf32>
    %41 = arith.truncf %40 : vector<128x128xf32> to vector<128x128xbf16>
    %42 = vector.broadcast %23 : vector<1x128xi32> to vector<128x128xi32>
    %43 = arith.cmpi eq, %28, %42 : vector<128x128xi32>
    %cst_28 = arith.constant 1.000000e+00 : f32
    %cst_29 = arith.constant 0.000000e+00 : f32
    %44 = vector.broadcast %cst_28 : f32 to vector<128x128xf32>
    %45 = vector.broadcast %cst_29 : f32 to vector<128x128xf32>
    %46 = arith.select %43, %44, %45 : vector<128x128xi1>, vector<128x128xf32>
    %47 = vector.broadcast %25 : vector<1x128xi32> to vector<128x128xi32>
    %48 = arith.cmpi eq, %29, %47 : vector<128x128xi32>
    %cst_30 = arith.constant 1.000000e+00 : f32
    %cst_31 = arith.constant 0.000000e+00 : f32
    %49 = vector.broadcast %cst_30 : f32 to vector<128x128xf32>
    %50 = vector.broadcast %cst_31 : f32 to vector<128x128xf32>
    %51 = arith.select %48, %49, %50 : vector<128x128xi1>, vector<128x128xf32>
    %cst_32 = arith.constant dense<0.000000e+00> : vector<128xf32>
    %52 = vector.multi_reduction <add>, %46, %cst_32 [1] : vector<128x128xf32> to vector<128xf32>
    %53 = vector.shape_cast %52 : vector<128xf32> to vector<128x1xf32>
    %cst_33 = arith.constant dense<0.000000e+00> : vector<128xf32>
    %54 = vector.multi_reduction <add>, %51, %cst_33 [1] : vector<128x128xf32> to vector<128xf32>
    %55 = vector.shape_cast %54 : vector<128xf32> to vector<128x1xf32>
    %56 = arith.truncf %46 : vector<128x128xf32> to vector<128x128xbf16>
    %57 = arith.truncf %51 : vector<128x128xf32> to vector<128x128xbf16>
    %cst_34 = arith.constant dense<0.000000e+00> : vector<128x256xf32>
    %58 = tpu.matmul %35, %21, %cst_34 {dimension_numbers = #tpu.dot_dimension_numbers<[1], [0], [0], [1], [0, 0, 1, 1], [], []>} : vector<128x128xbf16>, vector<128x256xbf16>, vector<128x256xf32> -> vector<128x256xf32>
    %59 = vector.extract_strided_slice %58 {offsets = [0, 0], sizes = [128, 128], strides = [1, 1]} : vector<128x256xf32> to vector<128x128xf32>
    %60 = vector.extract_strided_slice %58 {offsets = [0, 128], sizes = [128, 128], strides = [1, 1]} : vector<128x256xf32> to vector<128x128xf32>
    %61 = arith.truncf %59 : vector<128x128xf32> to vector<128x128xbf16>
    %cst_35 = arith.constant dense<0.000000e+00> : vector<128x128xf32>
    %62 = tpu.matmul %57, %61, %cst_35 {dimension_numbers = #tpu.dot_dimension_numbers<[1], [0], [0], [1], [0, 0, 1, 1], [], []>} : vector<128x128xbf16>, vector<128x128xbf16>, vector<128x128xf32> -> vector<128x128xf32>
    %cst_36 = arith.constant 1.000000e+00 : f32
    %63 = vector.broadcast %cst_36 : f32 to vector<128x1xf32>
    %64 = arith.maximumf %55, %63 : vector<128x1xf32>
    %cst_37 = arith.constant 1.000000e+00 : f32
    %65 = vector.broadcast %cst_37 : f32 to vector<128x1xf32>
    %66 = arith.divf %65, %64 : vector<128x1xf32>
    %67 = vector.broadcast %66 : vector<128x1xf32> to vector<128x128xf32>
    %68 = arith.mulf %62, %67 : vector<128x128xf32>
    %69 = arith.truncf %68 : vector<128x128xf32> to vector<128x128xbf16>
    %c0_38 = arith.constant 0 : index
    %c0_39 = arith.constant 0 : index
    %70 = vector.load %arg11[%c0_38, %c0_39] : memref<128x128xbf16, #tpu.memory_space<vmem>>, vector<128x128xbf16>
    %cst_40 = arith.constant dense<0.000000e+00> : vector<128x128xf32>
    %71 = tpu.matmul %69, %70, %cst_40 {dimension_numbers = #tpu.dot_dimension_numbers<[1], [0], [0], [1], [0, 0, 1, 1], [], []>} : vector<128x128xbf16>, vector<128x128xbf16>, vector<128x128xf32> -> vector<128x128xf32>
    %72 = arith.truncf %71 : vector<128x128xf32> to vector<128x128xbf16>
    %cst_41 = arith.constant dense<0.000000e+00> : vector<128x128xf32>
    %73 = tpu.matmul %41, %72, %cst_41 {dimension_numbers = #tpu.dot_dimension_numbers<[1], [0], [0], [1], [0, 0, 1, 1], [], []>} : vector<128x128xbf16>, vector<128x128xbf16>, vector<128x128xf32> -> vector<128x128xf32>
    %74 = arith.addf %60, %73 : vector<128x128xf32>
    %cst_42 = arith.constant 0.000000e+00 : f32
    %75 = vector.broadcast %cst_42 : f32 to vector<128x128xf32>
    %76 = arith.maximumf %74, %75 : vector<128x128xf32>
    %77 = arith.truncf %76 : vector<128x128xf32> to vector<128x128xbf16>
    %c0_43 = arith.constant 0 : index
    %c0_44 = arith.constant 0 : index
    %78 = vector.load %arg13[%c0_43, %c0_44] : memref<128x128xbf16, #tpu.memory_space<vmem>>, vector<128x128xbf16>
    %cst_45 = arith.constant dense<0.000000e+00> : vector<128x128xf32>
    %79 = tpu.matmul %77, %78, %cst_45 {dimension_numbers = #tpu.dot_dimension_numbers<[1], [0], [0], [1], [0, 0, 1, 1], [], []>} : vector<128x128xbf16>, vector<128x128xbf16>, vector<128x128xf32> -> vector<128x128xf32>
    %c0_46 = arith.constant 0 : index
    %c0_47 = arith.constant 0 : index
    %80 = vector.load %arg14[%c0_46, %c0_47] : memref<1x128xf32, #tpu.memory_space<vmem>>, vector<1x128xf32>
    %81 = vector.broadcast %80 : vector<1x128xf32> to vector<128x128xf32>
    %82 = arith.addf %79, %81 : vector<128x128xf32>
    %83 = arith.truncf %82 : vector<128x128xf32> to vector<128x128xbf16>
    %cst_48 = arith.constant dense<0.000000e+00> : vector<128x128xf32>
    %84 = tpu.matmul %56, %83, %cst_48 {dimension_numbers = #tpu.dot_dimension_numbers<[1], [0], [0], [1], [0, 0, 1, 1], [], []>} : vector<128x128xbf16>, vector<128x128xbf16>, vector<128x128xf32> -> vector<128x128xf32>
    %cst_49 = arith.constant 1.000000e+00 : f32
    %85 = vector.broadcast %cst_49 : f32 to vector<128x1xf32>
    %86 = arith.maximumf %53, %85 : vector<128x1xf32>
    %cst_50 = arith.constant 1.000000e+00 : f32
    %87 = vector.broadcast %cst_50 : f32 to vector<128x1xf32>
    %88 = arith.divf %87, %86 : vector<128x1xf32>
    %89 = vector.broadcast %88 : vector<128x1xf32> to vector<128x128xf32>
    %90 = arith.mulf %84, %89 : vector<128x128xf32>
    %cst_51 = arith.constant 5.000000e-01 : f32
    %91 = vector.broadcast %cst_51 : f32 to vector<128x128xf32>
    %92 = arith.mulf %91, %90 : vector<128x128xf32>
    %cst_52 = arith.constant 5.000000e-01 : f32
    %93 = vector.broadcast %cst_52 : f32 to vector<128x128xf32>
    %94 = arith.mulf %93, %0 : vector<128x128xf32>
    %95 = arith.addf %92, %94 : vector<128x128xf32>
    %c0_53 = arith.constant 0 : index
    %c0_54 = arith.constant 0 : index
    %96 = vector.load %arg15[%c0_53, %c0_54] : memref<128x128xf32, #tpu.memory_space<vmem>>, vector<128x128xf32>
    tpu.vector_store %arg15[%c0_53, %c0_54], %95 {strides = array<i32>} : memref<128x128xf32, #tpu.memory_space<vmem>>, vector<128x128xf32>,
    return
  }
  func.func @transform_0(%arg0: i32) -> (i32, i32) {
    %c0_i32 = arith.constant 0 : i32
    %c0_i32_0 = arith.constant 0 : i32
    %c0_i32_1 = arith.constant 0 : i32
    return %c0_i32, %c0_i32_0 : i32, i32
  }
  func.func @transform_1(%arg0: i32) -> (i32, i32) {
    %c0_i32 = arith.constant 0 : i32
    %c0_i32_0 = arith.constant 0 : i32
    %c0_i32_1 = arith.constant 0 : i32
    return %c0_i32, %c0_i32_0 : i32, i32
  }
  func.func @transform_2(%arg0: i32) -> (i32, i32) {
    %c0_i32 = arith.constant 0 : i32
    %c0_i32_0 = arith.constant 0 : i32
    %c0_i32_1 = arith.constant 0 : i32
    return %c0_i32, %c0_i32_0 : i32, i32
  }
  func.func @transform_3(%arg0: i32) -> (i32, i32) {
    %c0_i32 = arith.constant 0 : i32
    %c0_i32_0 = arith.constant 0 : i32
    %c0_i32_1 = arith.constant 0 : i32
    return %c0_i32, %c0_i32_0 : i32, i32
  }
  func.func @transform_4(%arg0: i32) -> (i32, i32) {
    %c0_i32 = arith.constant 0 : i32
    %c0_i32_0 = arith.constant 0 : i32
    %c0_i32_1 = arith.constant 0 : i32
    return %c0_i32, %c0_i32_0 : i32, i32
  }
  func.func @transform_5(%arg0: i32) -> (i32, i32) {
    %c0_i32 = arith.constant 0 : i32
    %c0_i32_0 = arith.constant 0 : i32
    %c0_i32_1 = arith.constant 0 : i32
    return %c0_i32, %c0_i32_0 : i32, i32
  }
  func.func @transform_6(%arg0: i32) -> (i32, i32) {
    %c0_i32 = arith.constant 0 : i32
    %c0_i32_0 = arith.constant 0 : i32
    %c0_i32_1 = arith.constant 0 : i32
    return %c0_i32, %c0_i32_0 : i32, i32
  }
  func.func @transform_7(%arg0: i32) -> (i32, i32) {
    %c0_i32 = arith.constant 0 : i32
    %c0_i32_0 = arith.constant 0 : i32
    %c0_i32_1 = arith.constant 0 : i32
    return %c0_i32, %c0_i32_0 : i32, i32
  }
  func.func @transform_8(%arg0: i32) -> (i32, i32) {
    %c0_i32 = arith.constant 0 : i32
    %c0_i32_0 = arith.constant 0 : i32
    %c0_i32_1 = arith.constant 0 : i32
    return %c0_i32, %c0_i32_0 : i32, i32
  }
  func.func @transform_9(%arg0: i32) -> (i32, i32) {
    %c0_i32 = arith.constant 0 : i32
    %c0_i32_0 = arith.constant 0 : i32
    %c0_i32_1 = arith.constant 0 : i32
    return %c0_i32, %c0_i32_0 : i32, i32
  }
  func.func @transform_10(%arg0: i32) -> (i32, i32) {
    %c0_i32 = arith.constant 0 : i32
    %c0_i32_0 = arith.constant 0 : i32
    %c0_i32_1 = arith.constant 0 : i32
    return %c0_i32, %c0_i32_0 : i32, i32
  }
  func.func @transform_11(%arg0: i32) -> (i32, i32) {
    %c0_i32 = arith.constant 0 : i32
    %c0_i32_0 = arith.constant 0 : i32
    %c0_i32_1 = arith.constant 0 : i32
    return %c0_i32, %c0_i32_0 : i32, i32
  }
  func.func @transform_12(%arg0: i32) -> (i32, i32) {
    %c0_i32 = arith.constant 0 : i32
    %c0_i32_0 = arith.constant 0 : i32
    %c0_i32_1 = arith.constant 0 : i32
    return %c0_i32, %c0_i32_0 : i32, i32
  }
  func.func @transform_13(%arg0: i32) -> (i32, i32) {
    %c0_i32 = arith.constant 0 : i32
    %c0_i32_0 = arith.constant 0 : i32
    %c0_i32_1 = arith.constant 0 : i32
    return %c0_i32, %c0_i32_0 : i32, i32
  }
  func.func @transform_14(%arg0: i32) -> (i32, i32) {
    %c0_i32 = arith.constant 0 : i32
    %c0_i32_0 = arith.constant 0 : i32
    %c0_i32_1 = arith.constant 0 : i32
    return %c0_i32, %c0_i32_0 : i32, i32
  }
}

</mosaic_0001>

<bundles_post_ra>
// kernel: tpu_custom_call.1
= control target key start
LH: loop header
LB: loop body
LE: loop exit
PB: predicated region body
PF: predicated region fallthrough
CT: control target
= control target key end

     0   :  { %19 = vsyncpa [#allocation3], 0  ;;  %s3861_s0 = inlined_call_operand.vmem [shape: f32[128,128], index: 0, kind: input, shape index: {}]   ;;  %s3862_s1 = inlined_call_operand.vmem [shape: s32[128,1], index: 1, kind: input, shape index: {}]   ;;  %s3863_s2 = inlined_call_operand.vmem [shape: s32[1,128], index: 2, kind: input, shape index: {}]   ;;  %s3864_s3 = inlined_call_operand.vmem [shape: s32[128,1], index: 3, kind: input, shape index: {}]   ;;  %s3865_s4 = inlined_call_operand.vmem [shape: s32[1,128], index: 4, kind: input, shape index: {}]   ;;  %s3866_s5 = inlined_call_operand.vmem [shape: bf16[128,128], index: 5, kind: input, shape index: {}]   ;;  %s3867_s6 = inlined_call_operand.vmem [shape: f32[1,128], index: 6, kind: input, shape index: {}]   ;;  %s3868_s7 = inlined_call_operand.vmem [shape: bf16[128,128], index: 7, kind: input, shape index: {}]   ;;  %s3869_s8 = inlined_call_operand.vmem [shape: f32[1,128], index: 8, kind: input, shape index: {}]   ;;  %s3870_s9 = inlined_call_operand.hbm [shape: bf16[128,128], index: 9, kind: input, shape index: {}]   ;;  %s3871_s10 = inlined_call_operand.hbm [shape: bf16[128,128], index: 10, kind: input, shape index: {}]   ;;  %s3872_s11 = inlined_call_operand.vmem [shape: f32[1,128], index: 11, kind: input, shape index: {}]   ;;  %s3873_s12 = inlined_call_operand.hbm [shape: bf16[128,128], index: 12, kind: input, shape index: {}]   ;;  %s3874_s13 = inlined_call_operand.vmem [shape: f32[1,128], index: 13, kind: input, shape index: {}]   ;;  %s3875_s14 = inlined_call_operand.hbm [shape: f32[128,128], index: 14, kind: output, shape index: {}]  }
   0x1   :  { %20 = vsyncpa [#allocation6], 0 }
   0x2   :  { %21 = vsyncpa [#allocation4], 0  ;;  %s2775_s29 = smov [#allocation5]   ;;  %s2776_s15 = smov [#allocation2]  }
   0x3   :  { %s57_s30 = sshll.u32 %s2775_s29, 4  ;;  %s45_s16 = sshll.u32 %s2776_s15, 4  ;;  %s58_s30 = int_to_ptr.vmem [resolvable:$true] %s57_s30  ;;  %s2861_s16 = int_to_ptr.vmem [resolvable:$true] %s45_s16 }
   0x4   :  { %s2681_s19 = scalar_lea.hbm %s3871_s10, 1024 }
   0x5   :  { %p2682_p0 = scmp.ne.s32.totalorder %s3871_s10, %s2681_s19  ;;  %p2685_p1 = scmp.lt.u32.totalorder %s2681_s19, %s3871_s10 }
   0x7   :  { %p2687_p2 = pnand %p2685_p1, %p2682_p0 }
   0x9   :  { %2690 = shalt.err (!%p2687_p2)
}
   0xa   :  { %s2691_s24 = scalar_lea.vmem %s58_s30, 1024  ;;  %p2696_p4 = scmp.lt.s32.totalorder %s58_s30, %s58_s30 }
   0xb   :  { %p2692_p3 = scmp.ne.s32.totalorder %s58_s30, %s2691_s24  ;;  %p2697_p5 = scmp.lt.s32.totalorder %s2691_s24, %s2691_s24 }
   0xd   :  { %p2698_p6 = por %p2697_p5, %p2696_p4 }
   0xf   :  { %p2699_p7 = pnand %p2698_p6, %p2692_p3 }
  0x11   :  { %2702 = shalt.err (!%p2699_p7)
}
  0x12   :  { %s2777_s25 = smov 64   ;;  %s2778_s26 = smov 4  }
  0x13   :  { %63 = dma.hbm_to_vmem [thread:$0]  %s3871_s10, 1024, %s58_s30, [#allocation6], %s2777_s25, %s2777_s25, %s2778_s26  }
  0x14   :  { %s2703_s17 = scalar_lea.hbm %s3870_s9, 1024 }
  0x15   :  { %p2704_p8 = scmp.ne.s32.totalorder %s3870_s9, %s2703_s17  ;;  %p2707_p9 = scmp.lt.u32.totalorder %s2703_s17, %s3870_s9 }
  0x17   :  { %p2709_p10 = pnand %p2707_p9, %p2704_p8 }
  0x19   :  { %2712 = shalt.err (!%p2709_p10)
}
  0x1a   :  { %s2713_s22 = scalar_lea.vmem %s2861_s16, 1024  ;;  %p2718_p12 = scmp.lt.s32.totalorder %s2861_s16, %s2861_s16 }
  0x1b   :  { %p2714_p11 = scmp.ne.s32.totalorder %s2861_s16, %s2713_s22  ;;  %p2719_p13 = scmp.lt.s32.totalorder %s2713_s22, %s2713_s22 }
  0x1d   :  { %p2720_p0 = por %p2719_p13, %p2718_p12 }
  0x1f   :  { %p2721_p1 = pnand %p2720_p0, %p2714_p11 }
  0x21   :  { %2724 = shalt.err (!%p2721_p1)
}
  0x22   :  { %51 = dma.hbm_to_vmem [thread:$0]  %s3870_s9, 1024, %s2861_s16, [#allocation3], %s2777_s25, %s2777_s25, %s2778_s26  }
  0x23   :  { %s2779_s23 = smov [#allocation7]   ;;  %s2725_s29 = scalar_lea.hbm %s3873_s12, 1024 }
  0x24   :  { %s71_s24 = sshll.u32 %s2779_s23, 4  ;;  %p2726_p2 = scmp.ne.s32.totalorder %s3873_s12, %s2725_s29  ;;  %s72_s24 = int_to_ptr.vmem [resolvable:$true] %s71_s24 }
  0x25   :  { %p2729_p3 = scmp.lt.u32.totalorder %s2725_s29, %s3873_s12 }
  0x27   :  { %p2731_p4 = pnand %p2729_p3, %p2726_p2 }
  0x29   :  { %2734 = shalt.err (!%p2731_p4)
}
  0x2a   :  { %s2735_s20 = scalar_lea.vmem %s72_s24, 1024  ;;  %p2740_p6 = scmp.lt.s32.totalorder %s72_s24, %s72_s24 }
  0x2b   :  { %p2736_p5 = scmp.ne.s32.totalorder %s72_s24, %s2735_s20  ;;  %p2741_p7 = scmp.lt.s32.totalorder %s2735_s20, %s2735_s20 }
  0x2d   :  { %p2742_p8 = por %p2741_p7, %p2740_p6 }
  0x2f   :  { %p2743_p9 = pnand %p2742_p8, %p2736_p5 }
  0x31   :  { %2746 = shalt.err (!%p2743_p9)
}
  0x32   :  { %77 = dma.hbm_to_vmem [thread:$0]  %s3873_s12, 1024, %s72_s24, [#allocation6], %s2777_s25, %s2777_s25, %s2778_s26  }
  0x33   :  { %2769 = dma.done.wait [#allocation3], 1024  }
  0x34   :  { %2770 = vsyncadd [#allocation3], 4294966272 }
  0x35   :  { %2771 = dma.done.wait [#allocation6], 2048  }
  0x36   :  { %2772 = vsyncadd [#allocation6], 4294965248  ;;  %v3883_v0 = vmov 0   ;;  %v2561_v1 = vld [vmem:[%s3866_s5] sm:$0xff]   ;;  %v2562_v2 = vld [vmem:[%s3866_s5 + $0x8] sm:$0xff]   ;;  %s2783_s29 = smov [#allocation8]  }
  0x37   :  { %2560 = vset.pattern.permute.xlu1 %v3883_v0  ;;  %2559 = vset.pattern.permute.xlu0 %v3883_v0  ;;  %v2563_v3 = vld [vmem:[%s3866_s5 + $0x10] sm:$0xff]   ;;  %v2564_v4 = vld [vmem:[%s3866_s5 + $0x18] sm:$0xff]   ;;  %v90_v5 = vld [vmem:[%s3861_s0] sm:$0xff]  ;;  %s2041_s15 = sshll.u32 %s2783_s29, 4  ;;  %s2042_s15 = int_to_ptr.vmem [resolvable:$true] %s2041_s15 }
  0x38   :  { %2292 = vmatprep.subr.bf16.mxu0 %v2561_v1  ;;  %v91_v6 = vld [vmem:[%s3861_s0 + $0x8] sm:$0xff]  ;;  %v2565_v8 = vld [vmem:[%s3866_s5 + $0x20] sm:$0xff]   ;;  %v2574_v12 = vld [vmem:[%s3868_s7 + $0x10] sm:$0xff]   ;;  %s2747_s17 = scalar_lea.vmem %s2042_s15, 2048  ;;  %p2752_p11 = scmp.lt.s32.totalorder %s2042_s15, %s2042_s15 }
  0x39   :  { %2293 = vmatpush3.bf16.msra.mxu0 %v2561_v1  ;;  %v2933_v7 = vpack.c.bf16 %v91_v6, %v90_v5  ;;  %v2570_v9 = vld [vmem:[%s3868_s7] sm:$0xff]   ;;  %v2566_v10 = vld [vmem:[%s3866_s5 + $0x28] sm:$0xff]   ;;  %v2567_v13 = vld [vmem:[%s3866_s5 + $0x30] sm:$0xff]   ;;  %p2748_p10 = scmp.ne.s32.totalorder %s2042_s15, %s2747_s17  ;;  %p2753_p12 = scmp.lt.s32.totalorder %s2747_s17, %s2747_s17 }
  0x3a   :  { %2294 = vmatprep.subr.bf16.mxu0 %v2562_v2  ;;  %2324 = vmatprep.subr.bf16.mxu1 %v2570_v9  ;;  %v2572_v11 = vld [vmem:[%s3868_s7 + $0x8] sm:$0xff]   ;;  %v660_v14 = vld [vmem:[%s3862_s1 + $0x10] sm:$0xff]  ;;  %v658_v15 = vld [vmem:[%s3862_s1] sm:$0xff] }
  0x3b   :  { %2308 = vmatprep.mubr.bf16.mxu0 %v2933_v7  ;;  %2325 = vmatpush3.bf16.msra.mxu1 %v2570_v9  ;;  %v2576_v16 = vld [vmem:[%s3868_s7 + $0x18] sm:$0xff]   ;;  %v659_v18 = vld [vmem:[%s3862_s1 + $0x8] sm:$0xff]  ;;  %v92_v20 = vld [vmem:[%s3861_s0 + $0x10] sm:$0xff]  ;;  %p2754_p13 = por %p2753_p12, %p2752_p11 }
  0x3c   :  { %2326 = vmatprep.subr.bf16.mxu1 %v2572_v11  ;;  %718 = vperm.xlu1 %2560, %v660_v14   ;;  %v661_v17 = vld [vmem:[%s3862_s1 + $0x18] sm:$0xff]  ;;  %v663_v22 = vld [vmem:[%s3862_s1 + $0x28] sm:$0xff]  ;;  %v94_v23 = vld [vmem:[%s3861_s0 + $0x20] sm:$0xff] }
  0x3d   :  { %2295 = vmatpush3.bf16.msra.mxu0 %v2562_v2  ;;  %712 = vperm.xlu0 %2559, %v658_v15   ;;  %v2568_v19 = vld [vmem:[%s3866_s5 + $0x38] sm:$0xff]   ;;  %v95_v24 = vld [vmem:[%s3861_s0 + $0x28] sm:$0xff]  ;;  %v662_v25 = vld [vmem:[%s3862_s1 + $0x20] sm:$0xff]  ;;  %v692_v2 = vlaneseq  ;;  %p2755_p0 = pnand %p2754_p13, %p2748_p10 }
  0x3e   :  { %2296 = vmatprep.subr.bf16.mxu0 %v2563_v3  ;;  %v93_v21 = vld [vmem:[%s3861_s0 + $0x18] sm:$0xff]  ;;  %v2578_v26 = vld [vmem:[%s3868_s7 + $0x20] sm:$0xff]   ;;  %v2571_v29 = vld [vmem:[#allocation2 + $0x8] sm:$0xff]   ;;  %v2998_v31 = vpack.c.bf16 %v95_v24, %v94_v23 }
  0x3f   :  { %2327 = vmatpush3.bf16.msra.mxu1 %v2572_v11  ;;  %v2569_v27 = vld [vmem:[#allocation2] sm:$0xff]   ;;  %v2993_v28 = vpack.c.bf16 %v93_v21, %v92_v20  ;;  %v2580_v30 = vld [vmem:[%s3868_s7 + $0x28] sm:$0xff]   ;;  %v96_v32 = vld [vmem:[%s3861_s0 + $0x30] sm:$0xff] }
  0x40   :  { %2328 = vmatprep.subr.bf16.mxu1 %v2574_v12  ;;  %721 = vperm.xlu1 %2560, %v661_v17   ;;  %v97_v33 = vld [vmem:[%s3861_s0 + $0x38] sm:$0xff]  ;;  %v98_v34 = vld [vmem:[%s3861_s0 + $0x40] sm:$0xff]  ;;  %v99_v35 = vld [vmem:[%s3861_s0 + $0x48] sm:$0xff] }
  0x41   :  { %2297 = vmatpush3.bf16.msra.mxu0 %v2563_v3  ;;  %715 = vperm.xlu0 %2559, %v659_v18   ;;  %v2573_v36 = vld [vmem:[#allocation2 + $0x10] sm:$0xff]   ;;  %v109_v37 = vpack.c.bf16 %v97_v33, %v96_v32  ;;  %v2575_v38 = vld [vmem:[#allocation2 + $0x18] sm:$0xff]   ;;  %v110_v39 = vpack.c.bf16 %v99_v35, %v98_v34  ;;  %v102_v42 = vld [vmem:[%s3861_s0 + $0x60] sm:$0xff]  ;;  %v3072_v3 = vshrl.u32 %v692_v2, 7  ;;  %v3881_v18 = vmov 0.0  }
  0x42   :  { %2298 = vmatprep.subr.bf16.mxu0 %v2564_v4  ;;  %v100_v40 = vld [vmem:[%s3861_s0 + $0x50] sm:$0xff]  ;;  %v101_v41 = vld [vmem:[%s3861_s0 + $0x58] sm:$0xff]  ;;  %v103_v43 = vld [vmem:[%s3861_s0 + $0x68] sm:$0xff] }
  0x43   :  { %2329 = vmatpush3.bf16.msra.mxu1 %v2574_v12  ;;  %v2577_v44 = vld [vmem:[#allocation2 + $0x20] sm:$0xff]   ;;  %v111_v45 = vpack.c.bf16 %v101_v41, %v100_v40  ;;  %v112_v46 = vpack.c.bf16 %v103_v43, %v102_v42  ;;  %v2579_v47 = vld [vmem:[#allocation2 + $0x28] sm:$0xff]   ;;  %v104_v48 = vld [vmem:[%s3861_s0 + $0x70] sm:$0xff]  ;;  %v3080_v5 = vadd.s32 8, %v3072_v3  ;;  %v3083_v6 = vadd.s32 16, %v3072_v3 }
  0x44   :  { %2330 = vmatprep.subr.bf16.mxu1 %v2576_v16  ;;  %727 = vperm.xlu1 %2560, %v663_v22   ;;  %v105_v49 = vld [vmem:[%s3861_s0 + $0x78] sm:$0xff]  ;;  %v2581_v50 = vld [vmem:[#allocation2 + $0x30] sm:$0xff]   ;;  %v667_v56 = vld [vmem:[%s3862_s1 + $0x48] sm:$0xff]  ;;  %v3092_v9 = vadd.s32 40, %v3072_v3  ;;  %v3106_v11 = vadd.s32 48, %v3072_v3  ;;  %v3113_v12 = vadd.s32 64, %v3072_v3 }
  0x45   :  { %2299 = vmatpush3.bf16.msra.mxu0 %v2564_v4  ;;  %724 = vperm.xlu0 %2559, %v662_v25   ;;  %v113_v51 = vpack.c.bf16 %v105_v49, %v104_v48  ;;  %v665_v52 = vld [vmem:[%s3862_s1 + $0x38] sm:$0xff]  ;;  %v664_v53 = vld [vmem:[%s3862_s1 + $0x30] sm:$0xff]  ;;  %v666_v57 = vld [vmem:[%s3862_s1 + $0x40] sm:$0xff]  ;;  %v3130_v14 = vadd.s32 56, %v3072_v3  ;;  %v3146_v17 = vadd.s32 72, %v3072_v3  ;;  %v3154_v20 = vadd.s32 88, %v3072_v3 }
  0x46   :  { %2300 = vmatprep.subr.bf16.mxu0 %v2565_v8  ;;  %v2582_v54 = vld [vmem:[%s3868_s7 + $0x30] sm:$0xff]   ;;  %v2583_v55 = vld [vmem:[#allocation2 + $0x38] sm:$0xff]   ;;  %v671_v61 = vld [vmem:[%s3862_s1 + $0x68] sm:$0xff]  ;;  %v3171_v22 = vadd.s32 96, %v3072_v3  ;;  %v3188_v24 = vadd.s32 112, %v3072_v3 }
  0x47   :  { %2331 = vmatpush3.bf16.msra.mxu1 %v2576_v16  ;;  %v2584_v58 = vld [vmem:[%s3868_s7 + $0x38] sm:$0xff]   ;;  %v668_v60 = vld [vmem:[%s3862_s1 + $0x50] sm:$0xff]  ;;  %v670_v62 = vld [vmem:[%s3862_s1 + $0x60] sm:$0xff]  ;;  %v3143_v16 = vadd.s32 80, %v3072_v3 }
  0x48   :  { %2332 = vmatprep.subr.bf16.mxu1 %v2578_v26  ;;  %733 = vperm.xlu1 %2560, %v665_v52   ;;  %v669_v59 = vld [vmem:[%s3862_s1 + $0x58] sm:$0xff]  ;;  %v672_v1 = vld [vmem:[%s3862_s1 + $0x70] sm:$0xff]  ;;  %v3077_v4 = vld [vmem:[%s3865_s4] ss:$0 sm:$0xff] }
  0x49   :  { %2301 = vmatpush3.bf16.msra.mxu0 %v2565_v8  ;;  %730 = vperm.xlu0 %2559, %v664_v53   ;;  %v673_v63 = vld [vmem:[%s3862_s1 + $0x78] sm:$0xff]  ;;  %v3089_v8 = vadd.s32 24, %v3072_v3  ;;  %vm927_vm0 = vcmp.eq.s32.totalorder %v3072_v3, %v3077_v4  ;;  %vm928_vm1 = vcmp.eq.s32.totalorder %v3080_v5, %v3077_v4  ;;  %vm929_vm3 = vcmp.eq.s32.totalorder %v3083_v6, %v3077_v4  ;;  %v676_v48 = vld [vmem:[%s3864_s3 + $0x8] sm:$0xff]  ;;  %v681_v52 = vld [vmem:[%s3864_s3 + $0x30] sm:$0xff] }
  0x4a   :  { %2302 = vmatprep.subr.bf16.mxu0 %v2566_v10  ;;  %vm3101_vm2 = vmpackc.low %vm928_vm1, %vm927_vm0  ;;  %vm932_vm7 = vcmp.eq.s32.totalorder %v3092_v9, %v3077_v4  ;;  %vm933_vm9 = vcmp.eq.s32.totalorder %v3106_v11, %v3077_v4  ;;  %vm3876_vm10 = vcmp.eq.s32.totalorder %v3130_v14, %v3077_v4  ;;  %vm3880_vm11 = vcmp.eq.s32.totalorder %v3113_v12, %v3077_v4  ;;  %v680_v49 = vld [vmem:[%s3864_s3 + $0x28] sm:$0xff]  ;;  %v2591_v21 = vld [vmem:[#allocation5 + $0x30] sm:$0xff]  }
  0x4b   :  { %2333 = vmatpush3.bf16.msra.mxu1 %v2578_v26  ;;  %3894 = vst [vmem:[#allocation12_spill] sm:$0xff] %v3089_v8  ;;  %vm930_vm4 = vcmp.eq.s32.totalorder %v3089_v8, %v3077_v4  ;;  %vm3164_vm12 = vmpackc.low %vm3876_vm10, %vm933_vm9  ;;  %vm3878_vm13 = vcmp.eq.s32.totalorder %v3146_v17, %v3077_v4  ;;  %vm3879_vm14 = vcmp.eq.s32.totalorder %v3143_v16, %v3077_v4  ;;  %v3201_v26 = vadd.s32 104, %v3072_v3  ;;  %v684_v53 = vld [vmem:[%s3864_s3 + $0x48] sm:$0xff]  ;;  %v2592_v23 = vld [vmem:[#allocation5 + $0x38] sm:$0xff]  }
  0x4c   :  { %2334 = vmatprep.subr.bf16.mxu1 %v2580_v30  ;;  %739 = vperm.xlu1 %2560, %v667_v56   ;;  %vm3123_vm6 = vmpackc.low %vm930_vm4, %vm929_vm3  ;;  %v946_v33 = vsel %vm930_vm4, 1.0, %v3881_v18  ;;  %v949_v34 = vsel %vm933_vm9, 1.0, %v3881_v18  ;;  %v948_v35 = vsel %vm932_vm7, 1.0, %v3881_v18  ;;  %vm3912_vm4 = vcmp.eq.s32.totalorder %v3130_v14, %v3077_v4  ;;  %v685_v56 = vld [vmem:[%s3864_s3 + $0x50] sm:$0xff]  ;;  %v2590_v15 = vld [vmem:[#allocation5 + $0x28] sm:$0xff]  }
  0x4d   :  { %2303 = vmatpush3.bf16.msra.mxu0 %v2566_v10  ;;  %736 = vperm.xlu0 %2559, %v666_v57   ;;  %vm3181_vm15 = vmpackc.low %vm3878_vm13, %vm3880_vm11  ;;  %vm940_vm13 = vcmp.eq.s32.totalorder %v3201_v26, %v3077_v4  ;;  %vm3913_vm9 = vcmp.eq.s32.totalorder %v3143_v16, %v3077_v4  ;;  %v688_v57 = vld [vmem:[%s3864_s3 + $0x68] sm:$0xff] }
  0x4e   :  { %2304 = vmatprep.subr.bf16.mxu0 %v2567_v13  ;;  %v956_v43 = vsel %vm940_vm13, 1.0, %v3881_v18 }
  0x4f   :  { %2335 = vmatpush3.bf16.msra.mxu1 %v2580_v30 }
  0x50   :  { %2336 = vmatprep.subr.bf16.mxu1 %v2582_v54  ;;  %745 = vperm.xlu1 %2560, %v669_v59   ;;  %v690_v59 = vld [vmem:[%s3864_s3 + $0x78] sm:$0xff] }
  0x51   :  { %2305 = vmatpush3.bf16.msra.mxu0 %v2567_v13  ;;  %742 = vperm.xlu0 %2559, %v668_v60   ;;  %v689_v60 = vld [vmem:[%s3864_s3 + $0x70] sm:$0xff]  ;;  %v2589_v13 = vld [vmem:[#allocation5 + $0x20] sm:$0xff]  }
  0x52   :  { %2306 = vmatprep.subr.bf16.mxu0 %v2568_v19 }
  0x53   :  { %2337 = vmatpush3.bf16.msra.mxu1 %v2582_v54  ;;  %v683_v54 = vld [vmem:[%s3864_s3 + $0x40] sm:$0xff] }
  0x54   :  { %2338 = vmatprep.subr.bf16.mxu1 %v2584_v58  ;;  %751 = vperm.xlu1 %2560, %v671_v61   ;;  %v2054_v61 = vld [vmem:[%s3867_s6] ss:$0 sm:$0xff] }
  0x55   :  { %2307 = vmatpush3.bf16.msra.mxu0 %v2568_v19  ;;  %748 = vperm.xlu0 %2559, %v670_v62   ;;  %v943_v19 = vsel %vm927_vm0, 1.0, %v3881_v18  ;;  %vm3877_vm0 = vcmp.eq.s32.totalorder %v3154_v20, %v3077_v4 }
  0x56   :  { %2356 = vmatprep.subr.bf16.mxu0 %v2569_v27  ;;  %vm3196_vm10 = vmpackc.low %vm3877_vm0, %vm3879_vm14  ;;  %vm939_vm0 = vcmp.eq.s32.totalorder %v3171_v22, %v3077_v4  ;;  %vm941_vm14 = vcmp.eq.s32.totalorder %v3188_v24, %v3077_v4 }
  0x57   :  { %2339 = vmatpush3.bf16.msra.mxu1 %v2584_v58  ;;  %v955_v40 = vsel %vm939_vm0, 1.0, %v3881_v18  ;;  %v957_v42 = vsel %vm941_vm14, 1.0, %v3881_v18  ;;  %v687_v58 = vld [vmem:[%s3864_s3 + $0x60] sm:$0xff] }
  0x58   :  { %2309 = vmatmul.mubr.bf16.vlgmr.msra.gmra.mrb[0].mxu0 %v2993_v28  ;;  %757 = vperm.xlu1 %2560, %v673_v63  }
  0x59   :  { %2312 = vmatprep.mubr.bf16.mxu0 %v2998_v31  ;;  %2357 = vmatpush3.bf16.msra.mxu0 %v2569_v27  ;;  %v3204_v27 = vadd.s32 120, %v3072_v3 }
  0x5a   :  { %2358 = vmatprep.subr.bf16.mxu0 %v2571_v29  ;;  %754 = vperm.xlu0 %2559, %v672_v1  }
  0x5d   :  { %2359 = vmatpush3.bf16.msra.mxu0 %v2571_v29  ;;  %v945_v29 = vsel %vm929_vm3, 1.0, %v3881_v18  ;;  %vm942_vm3 = vcmp.eq.s32.totalorder %v3204_v27, %v3077_v4 }
  0x5e   :  { %2360 = vmatprep.subr.bf16.mxu0 %v2573_v36  ;;  %vm3238_vm11 = vmpackc.low %vm942_vm3, %vm941_vm14 }
  0x60   :  { %2313 = vmatmul.mubr.bf16.gmra.mrb[4].mxu0 %v109_v37 }
  0x61   :  { %2316 = vmatprep.mubr.bf16.mxu0 %v110_v39  ;;  %2361 = vmatpush3.bf16.msra.mxu0 %v2573_v36 }
  0x62   :  { %2362 = vmatprep.subr.bf16.mxu0 %v2575_v38 }
  0x65   :  { %2363 = vmatpush3.bf16.msra.mxu0 %v2575_v38  ;;  %v953_v38 = vsel %vm3913_vm9, 1.0, %v3881_v18 }
  0x66   :  { %2364 = vmatprep.subr.bf16.mxu0 %v2577_v44 }
  0x68   :  { %2317 = vmatmul.mubr.bf16.gmra.mrb[8].mxu0 %v111_v45 }
  0x69   :  { %2320 = vmatprep.mubr.bf16.mxu0 %v112_v46  ;;  %2365 = vmatpush3.bf16.msra.mxu0 %v2577_v44  ;;  %v958_v44 = vsel %vm942_vm3, 1.0, %v3881_v18 }
  0x6a   :  { %2366 = vmatprep.subr.bf16.mxu0 %v2579_v47 }
  0x6d   :  { %2367 = vmatpush3.bf16.msra.mxu0 %v2579_v47  ;;  %v678_v47 = vld [vmem:[%s3864_s3 + $0x18] sm:$0xff] }
  0x6e   :  { %2368 = vmatprep.subr.bf16.mxu0 %v2581_v50 }
  0x70   :  { %2321 = vmatmul.mubr.bf16.gmra.mrb[12].mxu0 %v113_v51 }
  0x71   :  { %2369 = vmatpush3.bf16.msra.mxu0 %v2581_v50  ;;  %2372 = vmatprep.mubr.bf16.mxu0 %v2933_v7  ;;  %v3086_v7 = vadd.s32 32, %v3072_v3  ;;  %v679_v50 = vld [vmem:[%s3864_s3 + $0x20] sm:$0xff] }
  0x72   :  { %2370 = vmatprep.subr.bf16.mxu0 %v2583_v55 }
  0x73   :  { %vm931_vm5 = vcmp.eq.s32.totalorder %v3086_v7, %v3077_v4 }
  0x74   :  { %vm3138_vm8 = vmpackc.low %vm932_vm7, %vm931_vm5  ;;  %v947_v32 = vsel %vm931_vm5, 1.0, %v3881_v18  ;;  %vm3911_vm5 = vcmp.eq.s32.totalorder %v3113_v12, %v3077_v4  ;;  %vm3914_vm7 = vcmp.eq.s32.totalorder %v3146_v17, %v3077_v4 }
  0x75   :  { %2371 = vmatpush3.bf16.msra.mxu0 %v2583_v55  ;;  %v951_v36 = vsel %vm3911_vm5, 1.0, %v3881_v18  ;;  %vm3915_vm5 = vcmp.eq.s32.totalorder %v3154_v20, %v3077_v4  ;;  %v686_v55 = vld [vmem:[%s3864_s3 + $0x58] sm:$0xff] }
  0x76   :  { %v954_v41 = vsel %vm3915_vm5, 1.0, %v3881_v18 }
  0x78   :  { %2373 = vmatmul.mubr.bf16.vlgmr.msra.gmra.mrb[16].mxu0 %v2993_v28  ;;  %v944_v28 = vsel %vm928_vm1, 1.0, %v3881_v18  ;;  %vm3226_vm1 = vmpackc.low %vm940_vm13, %vm939_vm0 }
  0x79   :  { %2376 = vmatprep.mubr.bf16.mxu0 %v2998_v31  ;;  %991 = vadd.xlane.f32.xlu0 %v943_v19 }
  0x7c   :  { %993 = vadd.xlane.f32.xlu1 %v944_v28 }
  0x7d   :  { %995 = vadd.xlane.f32.xlu0 %v945_v29 }
  0x80   :  { %2377 = vmatmul.mubr.bf16.gmra.mrb[20].mxu0 %v109_v37  ;;  %999 = vadd.xlane.f32.xlu1 %v947_v32  ;;  %v950_v37 = vsel %vm3912_vm4, 1.0, %v3881_v18 }
  0x81   :  { %2380 = vmatprep.mubr.bf16.mxu0 %v110_v39  ;;  %997 = vadd.xlane.f32.xlu0 %v946_v33  ;;  %v952_v39 = vsel %vm3914_vm7, 1.0, %v3881_v18 }
  0x84   :  { %1003 = vadd.xlane.f32.xlu1 %v949_v34 }
  0x85   :  { %1001 = vadd.xlane.f32.xlu0 %v948_v35 }
  0x88   :  { %2381 = vmatmul.mubr.bf16.gmra.mrb[24].mxu0 %v111_v45  ;;  %1007 = vadd.xlane.f32.xlu1 %v951_v36  ;;  %v675_v45 = vld [vmem:[%s3864_s3] sm:$0xff] }
  0x89   :  { %2384 = vmatprep.mubr.bf16.mxu0 %v112_v46  ;;  %1005 = vadd.xlane.f32.xlu0 %v950_v37  ;;  %v677_v46 = vld [vmem:[%s3864_s3 + $0x10] sm:$0xff] }
  0x8c   :  { %1011 = vadd.xlane.f32.xlu1 %v953_v38 }
  0x8d   :  { %1009 = vadd.xlane.f32.xlu0 %v952_v39 }
  0x90   :  { %2385 = vmatmul.mubr.bf16.gmra.mrb[28].mxu0 %v113_v51  ;;  %1015 = vadd.xlane.f32.xlu1 %v955_v40  ;;  %v682_v51 = vld [vmem:[%s3864_s3 + $0x38] sm:$0xff] }
  0x91   :  { %1013 = vadd.xlane.f32.xlu0 %v954_v41 }
  0x94   :  { %1019 = vadd.xlane.f32.xlu1 %v957_v42 }
  0x95   :  { %1017 = vadd.xlane.f32.xlu0 %v956_v43 }
  0x99   :  { %1021 = vadd.xlane.f32.xlu0 %v958_v44 }
  0xa5   :  { %800 = vperm.xlu1 %2560, %v675_v45  }
  0xa9   :  { %806 = vperm.xlu1 %2560, %v677_v46  }
  0xad   :  { %809 = vperm.xlu1 %2560, %v678_v47  }
  0xaf   :  { %803 = vperm.xlu0 %2559, %v676_v48  }
  0xb1   :  { %815 = vperm.xlu1 %2560, %v680_v49  }
  0xb3   :  { %812 = vperm.xlu0 %2559, %v679_v50  }
  0xb5   :  { %821 = vperm.xlu1 %2560, %v682_v51  }
  0xb7   :  { %818 = vperm.xlu0 %2559, %v681_v52  }
  0xb9   :  { %827 = vperm.xlu1 %2560, %v684_v53  }
  0xbb   :  { %824 = vperm.xlu0 %2559, %v683_v54  }
  0xbd   :  { %833 = vperm.xlu1 %2560, %v686_v55  }
  0xbf   :  { %830 = vperm.xlu0 %2559, %v685_v56  }
  0xc1   :  { %839 = vperm.xlu1 %2560, %v688_v57  }
  0xc3   :  { %836 = vperm.xlu0 %2559, %v687_v58  }
  0xc5   :  { %845 = vperm.xlu1 %2560, %v690_v59  }
  0xc7   :  { %842 = vperm.xlu0 %2559, %v689_v60  }
 0x12b   :  { %v2310_v62 = vpop.f32.mrb[0].mxu0 }
 0x12c   :  { %v228_v63 = vadd.f32 %v2310_v62, %v2054_v61  ;;  %v219_v1 = vpop.f32.mrb[1].mxu0 }
 0x12d   :  { %v220_v4 = vadd.f32 %v2054_v61, %v219_v1  ;;  %v2311_v19 = vpop.f32.mrb[2].mxu0 }
 0x12e   :  { %v231_v28 = vadd.f32 %v2311_v19, %v2054_v61  ;;  %v222_v29 = vpop.f32.mrb[3].mxu0  ;;  %v284_v33 = vmax.f32 %v228_v63, 0.0 }
 0x12f   :  { %v223_v32 = vadd.f32 %v2054_v61, %v222_v29  ;;  %v282_v35 = vmax.f32 %v220_v4, 0.0 }
 0x130   :  { %v285_v34 = vmax.f32 %v231_v28, 0.0 }
 0x131   :  { %v283_v36 = vmax.f32 %v223_v32, 0.0 }
 0x132   :  { %v299_v37 = vpack.c.bf16 %v285_v34, %v284_v33 }
 0x133   :  { %v2314_v38 = vpop.f32.mrb[4].mxu0  ;;  %v298_v39 = vpack.c.bf16 %v283_v36, %v282_v35 }
 0x134   :  { %v244_v40 = vadd.f32 %v2314_v38, %v2054_v61  ;;  %v235_v41 = vpop.f32.mrb[5].mxu0 }
 0x135   :  { %v236_v42 = vadd.f32 %v2054_v61, %v235_v41  ;;  %v2315_v43 = vpop.f32.mrb[6].mxu0  ;;  %2340 = vmatprep.mubr.bf16.mxu1 %v298_v39 }
 0x136   :  { %v247_v44 = vadd.f32 %v2315_v43, %v2054_v61  ;;  %v238_v45 = vpop.f32.mrb[7].mxu0  ;;  %2341 = vmatmul.mubr.bf16.vlgmr.msra.gmra.mrb[0].mxu1 %v299_v37  ;;  %v288_v47 = vmax.f32 %v244_v40, 0.0 }
 0x137   :  { %v239_v46 = vadd.f32 %v2054_v61, %v238_v45  ;;  %v286_v49 = vmax.f32 %v236_v42, 0.0  ;;  %v2072_v45 = vld [vmem:[%s3872_s11] ss:$0 sm:$0xff] }
 0x138   :  { %v289_v48 = vmax.f32 %v247_v44, 0.0 }
 0x139   :  { %v287_v50 = vmax.f32 %v239_v46, 0.0 }
 0x13a   :  { %v301_v51 = vpack.c.bf16 %v289_v48, %v288_v47 }
 0x13b   :  { %v300_v52 = vpack.c.bf16 %v287_v50, %v286_v49  ;;  %v2318_v53 = vpop.f32.mrb[8].mxu0 }
 0x13c   :  { %v260_v54 = vadd.f32 %v2318_v53, %v2054_v61  ;;  %v251_v55 = vpop.f32.mrb[9].mxu0 }
 0x13d   :  { %v252_v56 = vadd.f32 %v2054_v61, %v251_v55  ;;  %v2319_v57 = vpop.f32.mrb[10].mxu0  ;;  %2344 = vmatprep.mubr.bf16.mxu1 %v300_v52 }
 0x13e   :  { %v263_v58 = vadd.f32 %v2319_v57, %v2054_v61  ;;  %v254_v59 = vpop.f32.mrb[11].mxu0  ;;  %2345 = vmatmul.mubr.bf16.gmra.mrb[4].mxu1 %v301_v51  ;;  %v292_v62 = vmax.f32 %v260_v54, 0.0 }
 0x13f   :  { %v255_v60 = vadd.f32 %v2054_v61, %v254_v59  ;;  %v290_v1 = vmax.f32 %v252_v56, 0.0 }
 0x140   :  { %v293_v63 = vmax.f32 %v263_v58, 0.0 }
 0x141   :  { %v291_v4 = vmax.f32 %v255_v60, 0.0 }
 0x142   :  { %v303_v19 = vpack.c.bf16 %v293_v63, %v292_v62 }
 0x143   :  { %v302_v28 = vpack.c.bf16 %v291_v4, %v290_v1  ;;  %v2322_v29 = vpop.f32.mrb[12].mxu0 }
 0x144   :  { %v276_v32 = vadd.f32 %v2322_v29, %v2054_v61  ;;  %v267_v33 = vpop.f32.mrb[13].mxu0 }
 0x145   :  { %v268_v34 = vadd.f32 %v2054_v61, %v267_v33  ;;  %v2323_v35 = vpop.f32.mrb[14].mxu0  ;;  %2348 = vmatprep.mubr.bf16.mxu1 %v302_v28 }
 0x146   :  { %v279_v36 = vadd.f32 %v2323_v35, %v2054_v61  ;;  %v270_v37 = vpop.f32.mrb[15].mxu0  ;;  %2349 = vmatmul.mubr.bf16.gmra.mrb[8].mxu1 %v303_v19  ;;  %v296_v39 = vmax.f32 %v276_v32, 0.0 }
 0x147   :  { %v271_v38 = vadd.f32 %v2054_v61, %v270_v37  ;;  %v294_v41 = vmax.f32 %v268_v34, 0.0 }
 0x148   :  { %v297_v40 = vmax.f32 %v279_v36, 0.0 }
 0x149   :  { %v295_v42 = vmax.f32 %v271_v38, 0.0 }
 0x14a   :  { %v305_v43 = vpack.c.bf16 %v297_v40, %v296_v39 }
 0x14b   :  { %v304_v44 = vpack.c.bf16 %v295_v42, %v294_v41  ;;  %v2374_v46 = vpop.f32.mrb[16].mxu0 }
 0x14c   :  { %v588_v47 = vadd.f32 %v2374_v46, %v2072_v45  ;;  %v579_v48 = vpop.f32.mrb[17].mxu0 }
 0x14d   :  { %2352 = vmatprep.mubr.bf16.mxu1 %v304_v44  ;;  %v580_v49 = vadd.f32 %v2072_v45, %v579_v48  ;;  %v2375_v50 = vpop.f32.mrb[18].mxu0 }
 0x14e   :  { %2353 = vmatmul.mubr.bf16.gmra.mrb[12].mxu1 %v305_v43  ;;  %v591_v61 = vadd.f32 %v2375_v50, %v2072_v45  ;;  %v582_v51 = vpop.f32.mrb[19].mxu0  ;;  %v3885_v50 = vmov 1.0|1.0  }
 0x14f   :  { %1071 = vmatprep.mubr.bf16.mxu1 %v3883_v0  ;;  %v583_v52 = vadd.f32 %v2072_v45, %v582_v51  ;;  %2404 = vmatprep.mubr.msk.bf16.mxu0 %vm3101_vm2, %v3885_v50 }
 0x150   :  { %v645_v53 = vpack.c.bf16 %v591_v61, %v588_v47  ;;  %v3379_v61 = vpop.permute.xlu0 %712 }
 0x151   :  { %v643_v54 = vpack.c.bf16 %v583_v52, %v580_v49  ;;  %v3383_v52 = vpop.permute.xlu1 %718 }
 0x153   :  { %1039 = vmatprep.subr.bf16.mxu1 %v643_v54  ;;  %v2378_v55 = vpop.f32.mrb[20].mxu0 }
 0x154   :  { %v3349_v56 = vadd.f32 %v2378_v55, %v2072_v45  ;;  %v595_v57 = vpop.f32.mrb[21].mxu0  ;;  %v3381_v51 = vpop.permute.xlu0 %715 }
 0x155   :  { %v596_v58 = vadd.f32 %v2072_v45, %v595_v57  ;;  %v2379_v59 = vpop.f32.mrb[22].mxu0 }
 0x156   :  { %v3351_v60 = vadd.f32 %v2379_v59, %v2072_v45  ;;  %v598_v62 = vpop.f32.mrb[23].mxu0 }
 0x157   :  { %v599_v63 = vadd.f32 %v2072_v45, %v598_v62 }
 0x158   :  { %v649_v1 = vpack.c.bf16 %v3351_v60, %v3349_v56  ;;  %v3388_v55 = vpop.permute.xlu0 %724 }
 0x159   :  { %v647_v4 = vpack.c.bf16 %v599_v63, %v596_v58 }
 0x15b   :  { %v2382_v19 = vpop.f32.mrb[24].mxu0 }
 0x15c   :  { %v611_v28 = vpop.f32.mrb[25].mxu0  ;;  %v3355_v29 = vadd.f32 %v2382_v19, %v2072_v45  ;;  %v3390_v19 = vpop.permute.xlu1 %721 }
 0x15d   :  { %v3357_v32 = vadd.f32 %v2072_v45, %v611_v28  ;;  %v2383_v33 = vpop.f32.mrb[26].mxu0 }
 0x15e   :  { %v3359_v34 = vadd.f32 %v2383_v33, %v2072_v45  ;;  %v614_v35 = vpop.f32.mrb[27].mxu0 }
 0x15f   :  { %v615_v36 = vadd.f32 %v2072_v45, %v614_v35 }
 0x160   :  { %v653_v37 = vpack.c.bf16 %v3359_v34, %v3355_v29 }
 0x161   :  { %v651_v38 = vpack.c.bf16 %v615_v36, %v3357_v32  ;;  %v3392_v32 = vpop.permute.xlu0 %730 }
 0x163   :  { %v2386_v39 = vpop.f32.mrb[28].mxu0 }
 0x164   :  { %v627_v40 = vpop.f32.mrb[29].mxu0  ;;  %v3364_v41 = vadd.f32 %v2386_v39, %v2072_v45 }
 0x165   :  { %v3366_v42 = vadd.f32 %v2072_v45, %v627_v40  ;;  %v2387_v43 = vpop.f32.mrb[30].mxu0 }
 0x166   :  { %v3368_v44 = vadd.f32 %v2387_v43, %v2072_v45  ;;  %v630_v46 = vpop.f32.mrb[31].mxu0 }
 0x167   :  { %v3370_v47 = vadd.f32 %v2072_v45, %v630_v46  ;;  %v2063_v45 = vld [vmem:[%s3869_s8] ss:$0 sm:$0xff]  ;;  %v3394_v46 = vpop.permute.xlu1 %727 }
 0x168   :  { %v657_v48 = vpack.c.bf16 %v3368_v44, %v3364_v41 }
 0x169   :  { %v655_v49 = vpack.c.bf16 %v3370_v47, %v3366_v42 }
 0x209   :  { %v2342_v54 = vpop.f32.mrb[0].mxu1 }
 0x20a   :  { %v411_v56 = vpop.f32.mrb[1].mxu1  ;;  %v420_v58 = vadd.f32 %v2342_v54, %v2063_v45 }
 0x20b   :  { %v2343_v57 = vpop.f32.mrb[2].mxu1  ;;  %v412_v10 = vadd.f32 %v2063_v45, %v411_v56  ;;  %v3396_v56 = vpop.permute.xlu0 %736 }
 0x20c   :  { %v423_v59 = vadd.f32 %v2343_v57, %v2063_v45  ;;  %v414_v60 = vpop.f32.mrb[3].mxu1 }
 0x20d   :  { %v415_v62 = vadd.f32 %v2063_v45, %v414_v60 }
 0x20e   :  { %v644_v63 = vpack.c.bf16 %v423_v59, %v420_v58 }
 0x20f   :  { %v642_v28 = vpack.c.bf16 %v415_v62, %v412_v10  ;;  %v734_v62 = vpop.permute.xlu1 %733 }
 0x211   :  { %v2346_v33 = vpop.f32.mrb[4].mxu1  ;;  %1040 = vmatpush1.bf16.msra.mxu1 %v642_v28  ;;  %v3398_v28 = vpop.permute.xlu0 %742 }
 0x212   :  { %v427_v35 = vpop.f32.mrb[5].mxu1  ;;  %1041 = vmatprep.subr.bf16.mxu1 %v645_v53  ;;  %v436_v39 = vadd.f32 %v2346_v33, %v2063_v45 }
 0x213   :  { %v2347_v36 = vpop.f32.mrb[6].mxu1  ;;  %v428_v54 = vadd.f32 %v2063_v45, %v427_v35 }
 0x214   :  { %v439_v40 = vadd.f32 %v2347_v36, %v2063_v45  ;;  %v430_v43 = vpop.f32.mrb[7].mxu1 }
 0x215   :  { %v431_v57 = vadd.f32 %v2063_v45, %v430_v43  ;;  %1042 = vmatpush1.bf16.msra.mxu1 %v644_v63 }
 0x216   :  { %v648_v58 = vpack.c.bf16 %v439_v40, %v436_v39  ;;  %1043 = vmatprep.subr.bf16.mxu1 %v647_v4  ;;  %v740_v39 = vpop.permute.xlu1 %739  ;;  %v3400_v40 = vpop.permute.xlu0 %748 }
 0x217   :  { %v646_v59 = vpack.c.bf16 %v431_v57, %v428_v54 }
 0x219   :  { %v2350_v60 = vpop.f32.mrb[8].mxu1  ;;  %1044 = vmatpush1.bf16.msra.mxu1 %v646_v59 }
 0x21a   :  { %v443_v10 = vpop.f32.mrb[9].mxu1  ;;  %1045 = vmatprep.subr.bf16.mxu1 %v649_v1  ;;  %v452_v33 = vadd.f32 %v2350_v60, %v2063_v45 }
 0x21b   :  { %v2351_v53 = vpop.f32.mrb[10].mxu1  ;;  %v444_v0 = vadd.f32 %v2063_v45, %v443_v10 }
 0x21c   :  { %v455_v36 = vadd.f32 %v2351_v53, %v2063_v45  ;;  %v446_v18 = vpop.f32.mrb[11].mxu1  ;;  %v746_v53 = vpop.permute.xlu1 %745 }
 0x21d   :  { %v447_v35 = vadd.f32 %v2063_v45, %v446_v18  ;;  %1046 = vmatpush1.bf16.msra.mxu1 %v648_v58 }
 0x21e   :  { %v652_v63 = vpack.c.bf16 %v455_v36, %v452_v33  ;;  %1047 = vmatprep.subr.bf16.mxu1 %v651_v38  ;;  %v3409_v38 = vand.u32 127, %v692_v2  ;;  %v3411_v33 = vpop.permute.xlu0 %754  ;;  %v3916_v2 = vmov 0  }
 0x21f   :  { %v650_v43 = vpack.c.bf16 %v447_v35, %v444_v0 }
 0x220   :  { %vm759_vm2 = vcmp.eq.s32.totalorder %v3379_v61, %v3409_v38  ;;  %vm760_vm13 = vcmp.eq.s32.totalorder %v3381_v51, %v3409_v38  ;;  %v752_v29 = vpop.permute.xlu1 %751  ;;  %vm761_vm0 = vcmp.eq.s32.totalorder %v3383_v52, %v3409_v38  ;;  %vm762_vm3 = vcmp.eq.s32.totalorder %v3390_v19, %v3409_v38 }
 0x221   :  { %v2354_v4 = vpop.f32.mrb[12].mxu1  ;;  %1048 = vmatpush1.bf16.msra.mxu1 %v650_v43  ;;  %vm2083_vm14 = vmpackc.low %vm760_vm13, %vm759_vm2  ;;  %vm764_vm9 = vcmp.eq.s32.totalorder %v3394_v46, %v3409_v38  ;;  %vm763_vm7 = vcmp.eq.s32.totalorder %v3388_v55, %v3409_v38  ;;  %vm766_vm2 = vcmp.eq.s32.totalorder %v734_v62, %v3409_v38  ;;  %vm765_vm13 = vcmp.eq.s32.totalorder %v3392_v32, %v3409_v38 }
 0x222   :  { %v459_v54 = vpop.f32.mrb[13].mxu1  ;;  %1049 = vmatprep.subr.bf16.mxu1 %v653_v37  ;;  %v468_v57 = vadd.f32 %v2354_v4, %v2063_v45  ;;  %v3420_v34 = vpop.xlane.xlu0 %991  ;;  %vm2085_vm4 = vmpackc.low %vm762_vm3, %vm761_vm0  ;;  %vm768_vm0 = vcmp.eq.s32.totalorder %v740_v39, %v3409_v38  ;;  %vm767_vm3 = vcmp.eq.s32.totalorder %v3396_v56, %v3409_v38 }
 0x223   :  { %v2355_v1 = vpop.f32.mrb[14].mxu1  ;;  %v460_v10 = vadd.f32 %v2063_v45, %v459_v54  ;;  %vm2087_vm5 = vmpackc.low %vm764_vm9, %vm763_vm7  ;;  %vm770_vm9 = vcmp.eq.s32.totalorder %v746_v53, %v3409_v38  ;;  %vm769_vm7 = vcmp.eq.s32.totalorder %v3398_v28, %v3409_v38 }
 0x224   :  { %v471_v59 = vadd.f32 %v2355_v1, %v2063_v45  ;;  %v462_v60 = vpop.f32.mrb[15].mxu1  ;;  %v758_v37 = vpop.permute.xlu1 %757 }
 0x225   :  { %v463_v18 = vadd.f32 %v2063_v45, %v462_v60  ;;  %1050 = vmatpush1.bf16.msra.mxu1 %v652_v63 }
 0x226   :  { %v656_v58 = vpack.c.bf16 %v471_v59, %v468_v57  ;;  %1051 = vmatprep.subr.bf16.mxu1 %v655_v49  ;;  %v3428_v41 = vpop.xlane.xlu0 %995 }
 0x227   :  { %v654_v0 = vpack.c.bf16 %v463_v18, %v460_v10  ;;  %v1259_v25 = vmax.f32 %v3428_v41, 1.0 }
 0x228   :  { %v3432_v42 = vpop.xlane.xlu1 %993 }
 0x229   :  { %1052 = vmatpush1.bf16.msra.mxu1 %v654_v0  ;;  %2601 = vrcp.f32 %v1259_v25 }
 0x22a   :  { %1053 = vmatprep.subr.bf16.mxu1 %v657_v48  ;;  %v3434_v44 = vpop.xlane.xlu0 %997 }
 0x22b   :  { %v1260_v30 = vmax.f32 %v3434_v44, 1.0 }
 0x22c   :  { %v3440_v47 = vpop.xlane.xlu1 %999 }
 0x22d   :  { %1054 = vmatpush1.bf16.msra.mxu1 %v656_v58 }
 0x22e   :  { %v3442_v48 = vpop.xlane.xlu0 %1001 }
 0x22f   :  { %v1262_v41 = vmax.f32 %v3442_v48, 1.0 }
 0x230   :  { %2084 = vmatmul.mubr.msk.bf16.vlgmr.msra.gmra.mrb[16].mxu1 %vm2083_vm14, %v3885_v50  ;;  %v3449_v49 = vpop.xlane.xlu1 %1003  ;;  %vm2089_vm14 = vmpackc.low %vm766_vm2, %vm765_vm13  ;;  %vm772_vm2 = vcmp.eq.s32.totalorder %v752_v29, %v3409_v38  ;;  %vm771_vm13 = vcmp.eq.s32.totalorder %v3400_v40, %v3409_v38 }
 0x231   :  { %1081 = vmatprep.mubr.bf16.mxu1 %v3916_v2  ;;  %v1263_v31 = vmax.f32 %v3449_v49, 1.0 }
 0x232   :  { %v3451_v61 = vpop.xlane.xlu0 %1005 }
 0x234   :  { %v3458_v51 = vpop.xlane.xlu1 %1007 }
 0x236   :  { %v3460_v52 = vpop.xlane.xlu0 %1009 }
 0x237   :  { %v1266_v25 = vmax.f32 %v3460_v52, 1.0 }
 0x238   :  { %2086 = vmatmul.mubr.msk.bf16.gmra.mrb[20].mxu1 %vm2085_vm4, %v3885_v50  ;;  %vm2091_vm4 = vmpackc.low %vm768_vm0, %vm767_vm3  ;;  %v3464_v45 = vpop.xlane.xlu1 %1011  ;;  %vm774_vm0 = vcmp.eq.s32.totalorder %v758_v37, %v3409_v38  ;;  %vm773_vm3 = vcmp.eq.s32.totalorder %v3411_v33, %v3409_v38 }
 0x239   :  { %1091 = vmatprep.mubr.bf16.mxu1 %v3916_v2 }
 0x23a   :  { %v3466_v55 = vpop.xlane.xlu0 %1013 }
 0x23c   :  { %v3471_v19 = vpop.xlane.xlu1 %1015 }
 0x23e   :  { %v3473_v32 = vpop.xlane.xlu0 %1017 }
 0x240   :  { %2088 = vmatmul.mubr.msk.bf16.gmra.mrb[24].mxu1 %vm2087_vm5, %v3885_v50  ;;  %vm2093_vm5 = vmpackc.low %vm770_vm9, %vm769_vm7  ;;  %v3480_v46 = vpop.xlane.xlu1 %1019 }
 0x241   :  { %1101 = vmatprep.mubr.bf16.mxu1 %v3916_v2  ;;  %vm2097_vm7 = vmpackc.low %vm774_vm0, %vm773_vm3 }
 0x242   :  { %v3482_v56 = vpop.xlane.xlu0 %1021 }
 0x244   :  { %v801_v62 = vpop.permute.xlu1 %800 }
 0x246   :  { %v804_v28 = vpop.permute.xlu0 %803 }
 0x247   :  { %vm848_vm9 = vcmp.eq.s32.totalorder %v804_v28, %v3409_v38 }
 0x248   :  { %2090 = vmatmul.mubr.msk.bf16.gmra.mrb[28].mxu1 %vm2089_vm14, %v3885_v50  ;;  %vm2095_vm14 = vmpackc.low %vm772_vm2, %vm771_vm13 }
 0x249   :  { %1111 = vmatprep.mubr.bf16.mxu1 %v3916_v2 }
 0x250   :  { %2092 = vmatmul.mubr.msk.bf16.gmra.mrb[32].mxu1 %vm2091_vm4, %v3885_v50  ;;  %vm847_vm4 = vcmp.eq.s32.totalorder %v801_v62, %v3409_v38 }
 0x251   :  { %1121 = vmatprep.mubr.bf16.mxu1 %v3916_v2 }
 0x258   :  { %2094 = vmatmul.mubr.msk.bf16.gmra.mrb[36].mxu1 %vm2093_vm5, %v3885_v50  ;;  %vm2123_vm5 = vmpackc.low %vm848_vm9, %vm847_vm4 }
 0x259   :  { %1131 = vmatprep.mubr.bf16.mxu1 %v3916_v2 }
 0x260   :  { %2096 = vmatmul.mubr.msk.bf16.gmra.mrb[40].mxu1 %vm2095_vm14, %v3885_v50 }
 0x261   :  { %1141 = vmatprep.mubr.bf16.mxu1 %v3916_v2 }
 0x268   :  { %2098 = vmatmul.mubr.msk.bf16.gmra.mrb[44].mxu1 %vm2097_vm7, %v3885_v50 }
 0x269   :  { %2468 = vmatprep.mubr.msk.bf16.mxu1 %vm2123_vm5, %v3885_v50 }
 0x303   :  { %v1073_v36 = vpop.f32.mrb[16].mxu1 }
 0x304   :  { %v3493_v35 = vpop.f32.mrb[17].mxu1 }
 0x305   :  { %v1077_v63 = vpop.f32.mrb[18].mxu1 }
 0x306   :  { %v1152_v43 = vpack.c.bf16 %v1077_v63, %v1073_v36  ;;  %v3495_v39 = vpop.f32.mrb[19].mxu1 }
 0x308   :  { %2388 = vmatprep.subr.bf16.mxu0 %v1152_v43 }
 0x309   :  { %2389 = vmatpush3.bf16.msra.mxu0 %v1152_v43 }
 0x30b   :  { %v1083_v4 = vpop.f32.mrb[20].mxu1 }
 0x30c   :  { %v3497_v40 = vpop.f32.mrb[21].mxu1 }
 0x30d   :  { %v1087_v54 = vpop.f32.mrb[22].mxu1 }
 0x30e   :  { %v1153_v1 = vpack.c.bf16 %v1087_v54, %v1083_v4  ;;  %v3499_v57 = vpop.f32.mrb[23].mxu1 }
 0x310   :  { %2390 = vmatprep.subr.bf16.mxu0 %v1153_v1 }
 0x311   :  { %2391 = vmatpush3.bf16.msra.mxu0 %v1153_v1 }
 0x313   :  { %v1093_v59 = vpop.f32.mrb[24].mxu1 }
 0x314   :  { %v3501_v60 = vpop.f32.mrb[25].mxu1 }
 0x315   :  { %v1097_v10 = vpop.f32.mrb[26].mxu1 }
 0x316   :  { %v1154_v18 = vpack.c.bf16 %v1097_v10, %v1093_v59  ;;  %v3503_v58 = vpop.f32.mrb[27].mxu1 }
 0x318   :  { %2392 = vmatprep.subr.bf16.mxu0 %v1154_v18 }
 0x319   :  { %2393 = vmatpush3.bf16.msra.mxu0 %v1154_v18 }
 0x31b   :  { %v1103_v0 = vpop.f32.mrb[28].mxu1 }
 0x31c   :  { %v3505_v53 = vpop.f32.mrb[29].mxu1 }
 0x31d   :  { %v1107_v33 = vpop.f32.mrb[30].mxu1 }
 0x31e   :  { %v1155_v29 = vpack.c.bf16 %v1107_v33, %v1103_v0  ;;  %v3507_v2 = vpop.f32.mrb[31].mxu1 }
 0x320   :  { %2394 = vmatprep.subr.bf16.mxu0 %v1155_v29 }
 0x321   :  { %2395 = vmatpush3.bf16.msra.mxu0 %v1155_v29 }
 0x323   :  { %v1113_v37 = vpop.f32.mrb[32].mxu1 }
 0x324   :  { %v3509_v62 = vpop.f32.mrb[33].mxu1 }
 0x325   :  { %v1117_v28 = vpop.f32.mrb[34].mxu1 }
 0x326   :  { %v1156_v36 = vpack.c.bf16 %v1117_v28, %v1113_v37  ;;  %v3511_v63 = vpop.f32.mrb[35].mxu1 }
 0x328   :  { %2396 = vmatprep.subr.bf16.mxu0 %v1156_v36 }
 0x329   :  { %2397 = vmatpush3.bf16.msra.mxu0 %v1156_v36 }
 0x32b   :  { %v1123_v43 = vpop.f32.mrb[36].mxu1 }
 0x32c   :  { %v3513_v4 = vpop.f32.mrb[37].mxu1 }
 0x32d   :  { %v1127_v54 = vpop.f32.mrb[38].mxu1 }
 0x32e   :  { %v1157_v1 = vpack.c.bf16 %v1127_v54, %v1123_v43  ;;  %v3515_v59 = vpop.f32.mrb[39].mxu1  ;;  %v2585_v43 = vld [vmem:[#allocation5] sm:$0xff]   ;;  %v2586_v54 = vld [vmem:[#allocation5 + $0x8] sm:$0xff]  }
 0x330   :  { %2398 = vmatprep.subr.bf16.mxu0 %v1157_v1 }
 0x331   :  { %2399 = vmatpush3.bf16.msra.mxu0 %v1157_v1  ;;  %v3917_v1 = vmov 1.0|1.0  }
 0x333   :  { %v1133_v10 = vpop.f32.mrb[40].mxu1 }
 0x334   :  { %v3517_v18 = vpop.f32.mrb[41].mxu1 }
 0x335   :  { %v1137_v0 = vpop.f32.mrb[42].mxu1 }
 0x336   :  { %v1158_v33 = vpack.c.bf16 %v1137_v0, %v1133_v10  ;;  %v3519_v29 = vpop.f32.mrb[43].mxu1  ;;  %v2587_v10 = vld [vmem:[#allocation5 + $0x10] sm:$0xff]   ;;  %v2588_v0 = vld [vmem:[#allocation5 + $0x18] sm:$0xff]  }
 0x338   :  { %2400 = vmatprep.subr.bf16.mxu0 %v1158_v33 }
 0x339   :  { %2401 = vmatpush3.bf16.msra.mxu0 %v1158_v33  ;;  %v1258_v33 = vmax.f32 %v3432_v42, 1.0  ;;  %v1267_v42 = vmax.f32 %v3464_v45, 1.0 }
 0x33b   :  { %v1143_v37 = vpop.f32.mrb[44].mxu1 }
 0x33c   :  { %v3521_v28 = vpop.f32.mrb[45].mxu1 }
 0x33d   :  { %v1147_v36 = vpop.f32.mrb[46].mxu1 }
 0x33e   :  { %v1159_v50 = vpack.c.bf16 %v1147_v36, %v1143_v37  ;;  %v3523_v8 = vpop.f32.mrb[47].mxu1  ;;  %v1261_v37 = vmax.f32 %v3440_v47, 1.0  ;;  %v1264_v36 = vmax.f32 %v3451_v61, 1.0  ;;  %v1268_v47 = vmax.f32 %v3466_v55, 1.0 }
 0x33f   :  { %v1269_v55 = vmax.f32 %v3471_v19, 1.0 }
 0x340   :  { %2402 = vmatprep.subr.bf16.mxu0 %v1159_v50 }
 0x341   :  { %2403 = vmatpush3.bf16.msra.mxu0 %v1159_v50  ;;  %v1257_v50 = vmax.f32 %v3420_v34, 1.0 }
 0x342   :  { %2420 = vmatprep.subr.bf16.mxu0 %v2585_v43 }
 0x343   :  { %2603 = vrcp.f32 %v1257_v50 }
 0x344   :  { %2405 = vmatmul.mubr.msk.bf16.vlgmr.msra.gmra.mrb[32].mxu0 %vm3123_vm6, %v3917_v1  ;;  %2605 = vrcp.f32 %v1260_v30 }
 0x345   :  { %2408 = vmatprep.mubr.msk.bf16.mxu0 %vm3138_vm8, %v3917_v1  ;;  %2421 = vmatpush3.bf16.msra.mxu0 %v2585_v43  ;;  %2607 = vrcp.f32 %v1258_v33  ;;  %v2602_v43 = vpop.eup %2601 }
 0x346   :  { %2422 = vmatprep.subr.bf16.mxu0 %v2586_v54  ;;  %2609 = vrcp.f32 %v1263_v31  ;;  %v1271_v31 = vmax.f32 %v3480_v46, 1.0  ;;  %v1270_v46 = vmax.f32 %v3473_v32, 1.0 }
 0x347   :  { %2611 = vrcp.f32 %v1261_v37 }
 0x348   :  { %2613 = vrcp.f32 %v1264_v36 }
 0x349   :  { %2423 = vmatpush3.bf16.msra.mxu0 %v2586_v54  ;;  %2615 = vrcp.f32 %v1262_v41 }
 0x34a   :  { %2424 = vmatprep.subr.bf16.mxu0 %v2587_v10  ;;  %2617 = vrcp.f32 %v1267_v42 }
 0x34c   :  { %2409 = vmatmul.mubr.msk.bf16.gmra.mrb[36].mxu0 %vm3164_vm12, %v3917_v1 }
 0x34d   :  { %2412 = vmatprep.mubr.msk.bf16.mxu0 %vm3181_vm15, %v3917_v1  ;;  %2425 = vmatpush3.bf16.msra.mxu0 %v2587_v10  ;;  %v2604_v34 = vpop.eup %2603 }
 0x34e   :  { %2426 = vmatprep.subr.bf16.mxu0 %v2588_v0  ;;  %v2606_v44 = vpop.eup %2605 }
 0x34f   :  { %v2608_v10 = vpop.eup %2607 }
 0x350   :  { %v2610_v45 = vpop.eup %2609 }
 0x351   :  { %2427 = vmatpush3.bf16.msra.mxu0 %v2588_v0  ;;  %v1265_v0 = vmax.f32 %v3458_v51, 1.0  ;;  %v2612_v33 = vpop.eup %2611 }
 0x352   :  { %2428 = vmatprep.subr.bf16.mxu0 %v2589_v13  ;;  %v2614_v51 = vpop.eup %2613 }
 0x353   :  { %2619 = vrcp.f32 %v1265_v0 }
 0x354   :  { %2413 = vmatmul.mubr.msk.bf16.gmra.mrb[40].mxu0 %vm3196_vm10, %v3917_v1  ;;  %2621 = vrcp.f32 %v1268_v47 }
 0x355   :  { %2416 = vmatprep.mubr.msk.bf16.mxu0 %vm3226_vm1, %v3917_v1  ;;  %2429 = vmatpush3.bf16.msra.mxu0 %v2589_v13  ;;  %2623 = vrcp.f32 %v1266_v25 }
 0x356   :  { %2430 = vmatprep.subr.bf16.mxu0 %v2590_v15  ;;  %2625 = vrcp.f32 %v1271_v31 }
 0x357   :  { %2627 = vrcp.f32 %v1269_v55 }
 0x359   :  { %2431 = vmatpush3.bf16.msra.mxu0 %v2590_v15 }
 0x35a   :  { %2432 = vmatprep.subr.bf16.mxu0 %v2591_v21 }
 0x35c   :  { %2417 = vmatmul.mubr.msk.bf16.gmra.mrb[44].mxu0 %vm3238_vm11, %v3917_v1 }
 0x35d   :  { %2433 = vmatpush3.bf16.msra.mxu0 %v2591_v21 }
 0x35e   :  { %2434 = vmatprep.subr.bf16.mxu0 %v2592_v23 }
 0x361   :  { %2435 = vmatpush3.bf16.msra.mxu0 %v2592_v23 }
 0x417   :  { %v2406_v54 = vpop.f32.mrb[32].mxu0 }
 0x418   :  { %v1307_v49 = vmul.f32 %v2602_v43, %v2406_v54  ;;  %v1194_v13 = vpop.f32.mrb[33].mxu0  ;;  %v1272_v43 = vmax.f32 %v3482_v56, 1.0 }
 0x419   :  { %v1305_v61 = vmul.f32 %v2604_v34, %v1194_v13  ;;  %v2407_v15 = vpop.f32.mrb[34].mxu0 }
 0x41a   :  { %v1308_v21 = vmul.f32 %v2606_v44, %v2407_v15  ;;  %v1197_v23 = vpop.f32.mrb[35].mxu0  ;;  %v2616_v44 = vpop.eup %2615  ;;  %2629 = vrcp.f32 %v1272_v43 }
 0x41b   :  { %v1306_v48 = vmul.f32 %v2608_v10, %v1197_v23  ;;  %2631 = vrcp.f32 %v1270_v46  ;;  %v2593_v46 = vld [vmem:[#allocation7] sm:$0xff]  }
 0x41c   :  { %v1322_v50 = vpack.c.bf16 %v1308_v21, %v1307_v49  ;;  %v2618_v49 = vpop.eup %2617  ;;  %2484 = vmatprep.subr.bf16.mxu0 %v2593_v46 }
 0x41d   :  { %v1321_v30 = vpack.c.bf16 %v1306_v48, %v1305_v61  ;;  %v2620_v13 = vpop.eup %2619 }
 0x41e   :  { %v2622_v47 = vpop.eup %2621 }
 0x41f   :  { %v2410_v37 = vpop.f32.mrb[36].mxu0  ;;  %2436 = vmatprep.mubr.bf16.mxu0 %v1321_v30  ;;  %v2624_v48 = vpop.eup %2623 }
 0x420   :  { %v1311_v36 = vmul.f32 %v2610_v45, %v2410_v37  ;;  %v1210_v41 = vpop.f32.mrb[37].mxu0  ;;  %2437 = vmatmul.mubr.bf16.vlgmr.msra.gmra.mrb[48].mxu0 %v1322_v50  ;;  %v2626_v32 = vpop.eup %2625 }
 0x421   :  { %v1309_v34 = vmul.f32 %v2612_v33, %v1210_v41  ;;  %v2411_v52 = vpop.f32.mrb[38].mxu0  ;;  %2485 = vmatpush3.bf16.msra.mxu0 %v2593_v46 }
 0x422   :  { %v1312_v42 = vmul.f32 %v2614_v51, %v2411_v52  ;;  %v1213_v54 = vpop.f32.mrb[39].mxu0  ;;  %v2628_v51 = vpop.eup %2627 }
 0x423   :  { %v1310_v10 = vmul.f32 %v2616_v44, %v1213_v54 }
 0x424   :  { %v1324_v0 = vpack.c.bf16 %v1312_v42, %v1311_v36  ;;  %v2630_v31 = vpop.eup %2629 }
 0x425   :  { %v1323_v19 = vpack.c.bf16 %v1310_v10, %v1309_v34  ;;  %v2632_v34 = vpop.eup %2631 }
 0x427   :  { %v2414_v61 = vpop.f32.mrb[40].mxu0  ;;  %2440 = vmatprep.mubr.bf16.mxu0 %v1323_v19  ;;  %v2596_v19 = vld [vmem:[#allocation7 + $0x18] sm:$0xff]  }
 0x428   :  { %v1315_v56 = vmul.f32 %v2618_v49, %v2414_v61  ;;  %v1226_v15 = vpop.f32.mrb[41].mxu0  ;;  %2441 = vmatmul.mubr.bf16.gmra.mrb[52].mxu0 %v1324_v0  ;;  %v2594_v0 = vld [vmem:[#allocation7 + $0x8] sm:$0xff]   ;;  %v2595_v49 = vld [vmem:[#allocation7 + $0x10] sm:$0xff]  }
 0x429   :  { %v1313_v21 = vmul.f32 %v2620_v13, %v1226_v15  ;;  %v2415_v23 = vpop.f32.mrb[42].mxu0  ;;  %2486 = vmatprep.subr.bf16.mxu0 %v2594_v0  ;;  %v2597_v13 = vld [vmem:[#allocation7 + $0x20] sm:$0xff]  }
 0x42a   :  { %v1316_v25 = vmul.f32 %v2622_v47, %v2415_v23  ;;  %v1229_v50 = vpop.f32.mrb[43].mxu0  ;;  %2487 = vmatpush3.bf16.msra.mxu0 %v2594_v0  ;;  %v2598_v47 = vld [vmem:[#allocation7 + $0x28] sm:$0xff]  }
 0x42b   :  { %v1314_v45 = vmul.f32 %v2624_v48, %v1229_v50  ;;  %2488 = vmatprep.subr.bf16.mxu0 %v2595_v49 }
 0x42c   :  { %v1326_v30 = vpack.c.bf16 %v1316_v25, %v1315_v56 }
 0x42d   :  { %v1325_v33 = vpack.c.bf16 %v1314_v45, %v1313_v21 }
 0x42e   :  { %2489 = vmatpush3.bf16.msra.mxu0 %v2595_v49 }
 0x42f   :  { %v2418_v37 = vpop.f32.mrb[44].mxu0  ;;  %2444 = vmatprep.mubr.bf16.mxu0 %v1325_v33  ;;  %2490 = vmatprep.subr.bf16.mxu0 %v2596_v19  ;;  %v807_v33 = vpop.permute.xlu1 %806 }
 0x430   :  { %v1319_v55 = vmul.f32 %v2626_v32, %v2418_v37  ;;  %v1242_v36 = vpop.f32.mrb[45].mxu0  ;;  %2445 = vmatmul.mubr.bf16.gmra.mrb[56].mxu0 %v1326_v30  ;;  %vm849_vm6 = vcmp.eq.s32.totalorder %v807_v33, %v3409_v38 }
 0x431   :  { %v1317_v41 = vmul.f32 %v2628_v51, %v1242_v36  ;;  %v2419_v43 = vpop.f32.mrb[46].mxu0 }
 0x432   :  { %v1320_v52 = vmul.f32 %v2630_v31, %v2419_v43  ;;  %v1245_v44 = vpop.f32.mrb[47].mxu0  ;;  %2491 = vmatpush3.bf16.msra.mxu0 %v2596_v19 }
 0x433   :  { %v1318_v42 = vmul.f32 %v2632_v34, %v1245_v44  ;;  %2492 = vmatprep.subr.bf16.mxu0 %v2597_v13 }
 0x434   :  { %v1328_v54 = vpack.c.bf16 %v1320_v52, %v1319_v55  ;;  %v810_v55 = vpop.permute.xlu1 %809 }
 0x435   :  { %v1327_v10 = vpack.c.bf16 %v1318_v42, %v1317_v41  ;;  %v813_v42 = vpop.permute.xlu0 %812  ;;  %vm850_vm8 = vcmp.eq.s32.totalorder %v810_v55, %v3409_v38 }
 0x436   :  { %2493 = vmatpush3.bf16.msra.mxu0 %v2597_v13  ;;  %vm851_vm11 = vcmp.eq.s32.totalorder %v813_v42, %v3409_v38  ;;  %vm2125_vm12 = vmpackc.low %vm850_vm8, %vm849_vm6 }
 0x437   :  { %2448 = vmatprep.mubr.bf16.mxu0 %v1327_v10  ;;  %2494 = vmatprep.subr.bf16.mxu0 %v2598_v47 }
 0x438   :  { %2449 = vmatmul.mubr.bf16.gmra.mrb[60].mxu0 %v1328_v54  ;;  %v816_v52 = vpop.permute.xlu1 %815 }
 0x439   :  { %v819_v13 = vpop.permute.xlu0 %818  ;;  %vm852_vm10 = vcmp.eq.s32.totalorder %v816_v52, %v3409_v38 }
 0x43a   :  { %2495 = vmatpush3.bf16.msra.mxu0 %v2598_v47  ;;  %vm2127_vm15 = vmpackc.low %vm852_vm10, %vm851_vm11  ;;  %vm853_vm2 = vcmp.eq.s32.totalorder %v819_v13, %v3409_v38 }
 0x43c   :  { %v822_v19 = vpop.permute.xlu1 %821 }
 0x43d   :  { %vm854_vm1 = vcmp.eq.s32.totalorder %v822_v19, %v3409_v38 }
 0x43e   :  { %vm2129_vm0 = vmpackc.low %vm854_vm1, %vm853_vm2 }
 0x440   :  { %v828_v47 = vpop.permute.xlu1 %827 }
 0x441   :  { %vm856_vm13 = vcmp.eq.s32.totalorder %v828_v47, %v3409_v38 }
 0x4f3   :  { %v2438_v61 = vpop.f32.mrb[48].mxu0 }
 0x4f4   :  { %v1427_v56 = vpop.f32.mrb[49].mxu0 }
 0x4f5   :  { %v2439_v15 = vpop.f32.mrb[50].mxu0 }
 0x4f6   :  { %v1491_v21 = vpack.c.bf16 %v2439_v15, %v2438_v61  ;;  %v1430_v23 = vpop.f32.mrb[51].mxu0  ;;  %v825_v61 = vpop.permute.xlu0 %824 }
 0x4f7   :  { %v1490_v48 = vpack.c.bf16 %v1430_v23, %v1427_v56  ;;  %vm855_vm14 = vcmp.eq.s32.totalorder %v825_v61, %v3409_v38  ;;  %v834_v56 = vpop.permute.xlu1 %833 }
 0x4f8   :  { %vm2131_vm3 = vmpackc.low %vm856_vm13, %vm855_vm14  ;;  %vm858_vm4 = vcmp.eq.s32.totalorder %v834_v56, %v3409_v38 }
 0x4f9   :  { %2452 = vmatprep.subr.bf16.mxu1 %v1490_v48 }
 0x4fa   :  { %2453 = vmatpush3.bf16.msra.mxu1 %v1490_v48  ;;  %v831_v15 = vpop.permute.xlu0 %830 }
 0x4fb   :  { %v2442_v25 = vpop.f32.mrb[52].mxu0  ;;  %2454 = vmatprep.subr.bf16.mxu1 %v1491_v21  ;;  %vm857_vm9 = vcmp.eq.s32.totalorder %v831_v15, %v3409_v38 }
 0x4fc   :  { %v1443_v50 = vpop.f32.mrb[53].mxu0  ;;  %vm2133_vm6 = vmpackc.low %vm858_vm4, %vm857_vm9 }
 0x4fd   :  { %v2443_v45 = vpop.f32.mrb[54].mxu0 }
 0x4fe   :  { %v1493_v30 = vpack.c.bf16 %v2443_v45, %v2442_v25  ;;  %v1446_v32 = vpop.f32.mrb[55].mxu0  ;;  %2455 = vmatpush3.bf16.msra.mxu1 %v1491_v21  ;;  %v840_v21 = vpop.permute.xlu1 %839  ;;  %v2600_v45 = vld [vmem:[#allocation7 + $0x38] sm:$0xff]  }
 0x4ff   :  { %v1492_v51 = vpack.c.bf16 %v1446_v32, %v1443_v50  ;;  %v837_v23 = vpop.permute.xlu0 %836  ;;  %vm860_vm7 = vcmp.eq.s32.totalorder %v840_v21, %v3409_v38  ;;  %v2599_v50 = vld [vmem:[#allocation7 + $0x30] sm:$0xff]  }
 0x500   :  { %vm859_vm5 = vcmp.eq.s32.totalorder %v837_v23, %v3409_v38  ;;  %2496 = vmatprep.subr.bf16.mxu0 %v2599_v50 }
 0x501   :  { %2456 = vmatprep.subr.bf16.mxu1 %v1492_v51  ;;  %vm2135_vm8 = vmpackc.low %vm860_vm7, %vm859_vm5  ;;  %2497 = vmatpush3.bf16.msra.mxu0 %v2599_v50 }
 0x502   :  { %2457 = vmatpush3.bf16.msra.mxu1 %v1492_v51  ;;  %v846_v48 = vpop.permute.xlu1 %845  ;;  %2498 = vmatprep.subr.bf16.mxu0 %v2600_v45 }
 0x503   :  { %v2446_v31 = vpop.f32.mrb[56].mxu0  ;;  %2458 = vmatprep.subr.bf16.mxu1 %v1493_v30  ;;  %v843_v25 = vpop.permute.xlu0 %842  ;;  %vm862_vm10 = vcmp.eq.s32.totalorder %v846_v48, %v3409_v38 }
 0x504   :  { %v1459_v37 = vpop.f32.mrb[57].mxu0  ;;  %vm861_vm11 = vcmp.eq.s32.totalorder %v843_v25, %v3409_v38 }
 0x505   :  { %v2447_v36 = vpop.f32.mrb[58].mxu0  ;;  %2499 = vmatpush3.bf16.msra.mxu0 %v2600_v45 }
 0x506   :  { %v1495_v41 = vpack.c.bf16 %v2447_v36, %v2446_v31  ;;  %v1462_v43 = vpop.f32.mrb[59].mxu0  ;;  %2459 = vmatpush3.bf16.msra.mxu1 %v1493_v30 }
 0x507   :  { %v1494_v34 = vpack.c.bf16 %v1462_v43, %v1459_v37 }
 0x509   :  { %2460 = vmatprep.subr.bf16.mxu1 %v1494_v34 }
 0x50a   :  { %2461 = vmatpush3.bf16.msra.mxu1 %v1494_v34 }
 0x50b   :  { %v2450_v44 = vpop.f32.mrb[60].mxu0  ;;  %2462 = vmatprep.subr.bf16.mxu1 %v1495_v41 }
 0x50c   :  { %v1475_v54 = vpop.f32.mrb[61].mxu0 }
 0x50d   :  { %v2451_v10 = vpop.f32.mrb[62].mxu0 }
 0x50e   :  { %v1497_v46 = vpack.c.bf16 %v2451_v10, %v2450_v44  ;;  %v1478_v0 = vpop.f32.mrb[63].mxu0  ;;  %2463 = vmatpush3.bf16.msra.mxu1 %v1495_v41 }
 0x50f   :  { %v1496_v49 = vpack.c.bf16 %v1478_v0, %v1475_v54 }
 0x511   :  { %2464 = vmatprep.subr.bf16.mxu1 %v1496_v49 }
 0x512   :  { %2465 = vmatpush3.bf16.msra.mxu1 %v1496_v49 }
 0x513   :  { %2466 = vmatprep.subr.bf16.mxu1 %v1497_v46 }
 0x516   :  { %2467 = vmatpush3.bf16.msra.mxu1 %v1497_v46 }
 0x519   :  { %2469 = vmatmul.mubr.msk.bf16.vlgmr.msra.gmra.mrb[48].mxu1 %vm2125_vm12, %v3917_v1  ;;  %vm2137_vm12 = vmpackc.low %vm862_vm10, %vm861_vm11 }
 0x51a   :  { %2472 = vmatprep.mubr.msk.bf16.mxu1 %vm2127_vm15, %v3917_v1 }
 0x521   :  { %2473 = vmatmul.mubr.msk.bf16.gmra.mrb[52].mxu1 %vm2129_vm0, %v3917_v1 }
 0x522   :  { %2476 = vmatprep.mubr.msk.bf16.mxu1 %vm2131_vm3, %v3917_v1 }
 0x529   :  { %2477 = vmatmul.mubr.msk.bf16.gmra.mrb[56].mxu1 %vm2133_vm6, %v3917_v1 }
 0x52a   :  { %2480 = vmatprep.mubr.msk.bf16.mxu1 %vm2135_vm8, %v3917_v1 }
 0x531   :  { %2481 = vmatmul.mubr.msk.bf16.gmra.mrb[60].mxu1 %vm2137_vm12, %v3917_v1 }
 0x5ec   :  { %v2470_v30 = vpop.f32.mrb[48].mxu1 }
 0x5ed   :  { %v1597_v32 = vadd.f32 %v2470_v30, %v3497_v40  ;;  %v1532_v33 = vpop.f32.mrb[49].mxu1 }
 0x5ee   :  { %v1595_v51 = vadd.f32 %v1532_v33, %v3493_v35  ;;  %v2471_v31 = vpop.f32.mrb[50].mxu1 }
 0x5ef   :  { %v1598_v37 = vadd.f32 %v2471_v31, %v3499_v57  ;;  %v1535_v55 = vpop.f32.mrb[51].mxu1  ;;  %v1613_v36 = vmax.f32 %v1597_v32, 0.0 }
 0x5f0   :  { %v1596_v38 = vadd.f32 %v1535_v55, %v3495_v39  ;;  %v1611_v43 = vmax.f32 %v1595_v51, 0.0 }
 0x5f1   :  { %v1614_v41 = vmax.f32 %v1598_v37, 0.0 }
 0x5f2   :  { %v1612_v34 = vmax.f32 %v1596_v38, 0.0 }
 0x5f3   :  { %v1628_v52 = vpack.c.bf16 %v1614_v41, %v1613_v36 }
 0x5f4   :  { %v1627_v44 = vpack.c.bf16 %v1612_v34, %v1611_v43  ;;  %v2474_v42 = vpop.f32.mrb[52].mxu1 }
 0x5f5   :  { %v1601_v54 = vadd.f32 %v2474_v42, %v3505_v53  ;;  %v1548_v10 = vpop.f32.mrb[53].mxu1 }
 0x5f6   :  { %v1599_v40 = vadd.f32 %v1548_v10, %v3501_v60  ;;  %v2475_v46 = vpop.f32.mrb[54].mxu1  ;;  %2500 = vmatprep.mubr.bf16.mxu0 %v1627_v44 }
 0x5f7   :  { %v1602_v35 = vadd.f32 %v2475_v46, %v3507_v2  ;;  %v1551_v57 = vpop.f32.mrb[55].mxu1  ;;  %2501 = vmatmul.mubr.bf16.vlgmr.msra.gmra.mrb[64].mxu0 %v1628_v52  ;;  %v1617_v0 = vmax.f32 %v1601_v54, 0.0  ;;  %v3930_v54 = vmov 0.0  }
 0x5f8   :  { %v1600_v39 = vadd.f32 %v1551_v57, %v3503_v58  ;;  %v1615_v19 = vmax.f32 %v1599_v40, 0.0 }
 0x5f9   :  { %v1618_v49 = vmax.f32 %v1602_v35, 0.0  ;;  %v3931_v35 = vld [vmem:[#allocation12_spill] sm:$0xff] }
 0x5fa   :  { %v1616_v13 = vmax.f32 %v1600_v39, 0.0 }
 0x5fb   :  { %v1630_v47 = vpack.c.bf16 %v1618_v49, %v1617_v0 }
 0x5fc   :  { %v1629_v61 = vpack.c.bf16 %v1616_v13, %v1615_v19  ;;  %v2478_v56 = vpop.f32.mrb[56].mxu1 }
 0x5fd   :  { %v1605_v53 = vadd.f32 %v2478_v56, %v3513_v4  ;;  %v1564_v15 = vpop.f32.mrb[57].mxu1 }
 0x5fe   :  { %v1603_v60 = vadd.f32 %v1564_v15, %v3509_v62  ;;  %v2479_v21 = vpop.f32.mrb[58].mxu1  ;;  %2504 = vmatprep.mubr.bf16.mxu0 %v1629_v61 }
 0x5ff   :  { %v1606_v2 = vadd.f32 %v2479_v21, %v3515_v59  ;;  %v1567_v23 = vpop.f32.mrb[59].mxu1  ;;  %2505 = vmatmul.mubr.bf16.gmra.mrb[68].mxu0 %v1630_v47  ;;  %v1621_v48 = vmax.f32 %v1605_v53, 0.0 }
 0x600   :  { %v1604_v58 = vadd.f32 %v1567_v23, %v3511_v63  ;;  %v1619_v50 = vmax.f32 %v1603_v60, 0.0 }
 0x601   :  { %v1622_v25 = vmax.f32 %v1606_v2, 0.0 }
 0x602   :  { %v1620_v45 = vmax.f32 %v1604_v58, 0.0 }
 0x603   :  { %v1632_v30 = vpack.c.bf16 %v1622_v25, %v1621_v48 }
 0x604   :  { %v1631_v32 = vpack.c.bf16 %v1620_v45, %v1619_v50  ;;  %v2482_v33 = vpop.f32.mrb[60].mxu1 }
 0x605   :  { %v1609_v4 = vadd.f32 %v2482_v33, %v3521_v28  ;;  %v1580_v51 = vpop.f32.mrb[61].mxu1 }
 0x606   :  { %v1607_v62 = vadd.f32 %v1580_v51, %v3517_v18  ;;  %v2483_v31 = vpop.f32.mrb[62].mxu1  ;;  %2508 = vmatprep.mubr.bf16.mxu0 %v1631_v32  ;;  %v3602_v18 = vld [vmem:[%s3863_s2] ss:$0 sm:$0xff] }
 0x607   :  { %v1610_v59 = vadd.f32 %v2483_v31, %v3523_v8  ;;  %v1583_v37 = vpop.f32.mrb[63].mxu1  ;;  %2509 = vmatmul.mubr.bf16.gmra.mrb[72].mxu0 %v1632_v30  ;;  %v1625_v55 = vmax.f32 %v1609_v4, 0.0  ;;  %vm891_vm15 = vcmp.eq.s32.totalorder %v3072_v3, %v3602_v18  ;;  %vm892_vm1 = vcmp.eq.s32.totalorder %v3080_v5, %v3602_v18 }
 0x608   :  { %v1608_v63 = vadd.f32 %v1583_v37, %v3519_v29  ;;  %v1623_v36 = vmax.f32 %v1607_v62, 0.0  ;;  %vm2148_vm2 = vmpackc.low %vm892_vm1, %vm891_vm15  ;;  %vm895_vm13 = vcmp.eq.s32.totalorder %v3086_v7, %v3602_v18  ;;  %vm896_vm14 = vcmp.eq.s32.totalorder %v3092_v9, %v3602_v18 }
 0x609   :  { %v1626_v38 = vmax.f32 %v1610_v59, 0.0  ;;  %2532 = vmatprep.mubr.msk.bf16.mxu1 %vm2148_vm2, %v3917_v1  ;;  %vm3625_vm0 = vmpackc.low %vm896_vm14, %vm895_vm13  ;;  %vm897_vm3 = vcmp.eq.s32.totalorder %v3106_v11, %v3602_v18  ;;  %vm3892_vm4 = vcmp.eq.s32.totalorder %v3130_v14, %v3602_v18  ;;  %vm899_vm7 = vcmp.eq.s32.totalorder %v3113_v12, %v3602_v18 }
 0x60a   :  { %v1624_v41 = vmax.f32 %v1608_v63, 0.0  ;;  %vm3639_vm9 = vmpackc.low %vm3892_vm4, %vm897_vm3  ;;  %vm3889_vm5 = vcmp.eq.s32.totalorder %v3146_v17, %v3602_v18  ;;  %vm3891_vm8 = vcmp.eq.s32.totalorder %v3143_v16, %v3602_v18  ;;  %vm3890_vm10 = vcmp.eq.s32.totalorder %v3154_v20, %v3602_v18 }
 0x60b   :  { %v1634_v43 = vpack.c.bf16 %v1626_v38, %v1625_v55  ;;  %vm3653_vm6 = vmpackc.low %vm3889_vm5, %vm899_vm7  ;;  %vm903_vm12 = vcmp.eq.s32.totalorder %v3171_v22, %v3602_v18  ;;  %vm3893_vm2 = vcmp.eq.s32.totalorder %v3201_v26, %v3602_v18  ;;  %v907_v10 = vsel %vm891_vm15, 1.0, %v3930_v54 }
 0x60c   :  { %v1633_v34 = vpack.c.bf16 %v1624_v41, %v1623_v36  ;;  %vm3667_vm11 = vmpackc.low %vm3890_vm10, %vm3891_vm8  ;;  %vm905_vm10 = vcmp.eq.s32.totalorder %v3188_v24, %v3602_v18  ;;  %vm906_vm8 = vcmp.eq.s32.totalorder %v3204_v27, %v3602_v18  ;;  %v908_v40 = vsel %vm892_vm1, 1.0, %v3930_v54  ;;  %959 = vadd.xlane.f32.xlu0 %v907_v10  ;;  %v2139_v24 = vld [vmem:[%s3874_s13] ss:$0 sm:$0xff] }
 0x60d   :  { %vm3681_vm5 = vmpackc.low %vm3893_vm2, %vm903_vm12  ;;  %vm893_vm2 = vcmp.eq.s32.totalorder %v3083_v6, %v3602_v18  ;;  %961 = vadd.xlane.f32.xlu1 %v908_v40  ;;  %v911_v3 = vsel %vm895_vm13, 1.0, %v3930_v54  ;;  %vm894_vm15 = vcmp.eq.s32.totalorder %v3931_v35, %v3602_v18  ;;  %v913_v57 = vsel %vm897_vm3, 1.0, %v3930_v54 }
 0x60e   :  { %2512 = vmatprep.mubr.bf16.mxu0 %v1633_v34  ;;  %vm3695_vm4 = vmpackc.low %vm906_vm8, %vm905_vm10  ;;  %v909_v46 = vsel %vm893_vm2, 1.0, %v3930_v54  ;;  %v910_v5 = vsel %vm894_vm15, 1.0, %v3930_v54  ;;  %v912_v7 = vsel %vm896_vm14, 1.0, %v3930_v54  ;;  %v915_v39 = vsel %vm899_vm7, 1.0, %v3930_v54 }
 0x60f   :  { %2513 = vmatmul.mubr.bf16.gmra.mrb[76].mxu0 %v1634_v43  ;;  %vm3932_vm1 = vcmp.eq.s32.totalorder %v3130_v14, %v3602_v18  ;;  %vm3933_vm13 = vcmp.eq.s32.totalorder %v3143_v16, %v3602_v18  ;;  %vm3934_vm14 = vcmp.eq.s32.totalorder %v3146_v17, %v3602_v18  ;;  %v919_v12 = vsel %vm903_vm12, 1.0, %v3930_v54 }
 0x610   :  { %963 = vadd.xlane.f32.xlu0 %v909_v46  ;;  %v914_v11 = vsel %vm3932_vm1, 1.0, %v3930_v54  ;;  %v917_v0 = vsel %vm3933_vm13, 1.0, %v3930_v54  ;;  %v916_v9 = vsel %vm3934_vm14, 1.0, %v3930_v54  ;;  %vm3935_vm3 = vcmp.eq.s32.totalorder %v3154_v20, %v3602_v18 }
 0x611   :  { %967 = vadd.xlane.f32.xlu1 %v911_v3  ;;  %v918_v14 = vsel %vm3935_vm3, 1.0, %v3930_v54  ;;  %v921_v16 = vsel %vm905_vm10, 1.0, %v3930_v54  ;;  %vm3936_vm7 = vcmp.eq.s32.totalorder %v3201_v26, %v3602_v18  ;;  %v922_v22 = vsel %vm906_vm8, 1.0, %v3930_v54  ;;  %vm2150_vm8 = vmpackc.low %vm894_vm15, %vm893_vm2 }
 0x612   :  { %v920_v17 = vsel %vm3936_vm7, 1.0, %v3930_v54 }
 0x614   :  { %965 = vadd.xlane.f32.xlu0 %v910_v5 }
 0x615   :  { %971 = vadd.xlane.f32.xlu1 %v913_v57 }
 0x618   :  { %969 = vadd.xlane.f32.xlu0 %v912_v7 }
 0x619   :  { %975 = vadd.xlane.f32.xlu1 %v915_v39 }
 0x61c   :  { %973 = vadd.xlane.f32.xlu0 %v914_v11 }
 0x61d   :  { %979 = vadd.xlane.f32.xlu1 %v917_v0 }
 0x620   :  { %977 = vadd.xlane.f32.xlu0 %v916_v9 }
 0x621   :  { %983 = vadd.xlane.f32.xlu1 %v919_v12 }
 0x624   :  { %981 = vadd.xlane.f32.xlu0 %v918_v14 }
 0x625   :  { %987 = vadd.xlane.f32.xlu1 %v921_v16 }
 0x628   :  { %985 = vadd.xlane.f32.xlu0 %v920_v17 }
 0x62c   :  { %989 = vadd.xlane.f32.xlu0 %v922_v22 }
 0x699   :  { %v960_v6 = vpop.xlane.xlu0 %959 }
 0x69a   :  { %v962_v8 = vpop.xlane.xlu1 %961  ;;  %v1908_v7 = vmax.f32 %v960_v6, 1.0 }
 0x69b   :  { %v1909_v39 = vmax.f32 %v962_v8, 1.0  ;;  %v2670_v8 = vld [vmem:[%s3861_s0 + $0x20] sm:$0xff] }
 0x69d   :  { %v964_v18 = vpop.xlane.xlu0 %963 }
 0x69e   :  { %v968_v3 = vpop.xlane.xlu1 %967  ;;  %v1910_v57 = vmax.f32 %v964_v18, 1.0 }
 0x69f   :  { %v1912_v9 = vmax.f32 %v968_v3, 1.0 }
 0x6a0   :  { %2633 = vrcp.f32 %v1910_v57 }
 0x6a1   :  { %v966_v29 = vpop.xlane.xlu0 %965  ;;  %2635 = vrcp.f32 %v1908_v7  ;;  %v2671_v7 = vld [vmem:[%s3861_s0 + $0x38] sm:$0xff] }
 0x6a2   :  { %v972_v28 = vpop.xlane.xlu1 %971  ;;  %v1911_v52 = vmax.f32 %v966_v29, 1.0  ;;  %v1992_v29 = vmul.f32 0.5, %v2670_v8 }
 0x6a3   :  { %v1914_v42 = vmax.f32 %v972_v28, 1.0 }
 0x6a4   :  { %2637 = vrcp.f32 %v1911_v52  ;;  %v1995_v52 = vmul.f32 0.5, %v2671_v7 }
 0x6a5   :  { %v970_v35 = vpop.xlane.xlu0 %969  ;;  %2639 = vrcp.f32 %v1909_v39 }
 0x6a6   :  { %v976_v11 = vpop.xlane.xlu1 %975  ;;  %2641 = vrcp.f32 %v1914_v42  ;;  %v1913_v14 = vmax.f32 %v970_v35, 1.0 }
 0x6a9   :  { %v974_v5 = vpop.xlane.xlu0 %973 }
 0x6aa   :  { %v1915_v0 = vmax.f32 %v974_v5, 1.0  ;;  %v2634_v16 = vpop.eup %2633 }
 0x6ab   :  { %v2636_v17 = vpop.eup %2635 }
 0x6ac   :  { %2643 = vrcp.f32 %v1915_v0 }
 0x6ad   :  { %v978_v44 = vpop.xlane.xlu0 %977  ;;  %2645 = vrcp.f32 %v1912_v9 }
 0x6ae   :  { %2647 = vrcp.f32 %v1913_v14 }
 0x6b1   :  { %v982_v12 = vpop.xlane.xlu0 %981 }
 0x6ca   :  { %v2502_v20 = vpop.f32.mrb[64].mxu0 }
 0x6cb   :  { %v1740_v49 = vpop.f32.mrb[65].mxu0  ;;  %v1749_v13 = vadd.f32 %v2502_v20, %v2139_v24  ;;  %v2638_v20 = vpop.eup %2637 }
 0x6cc   :  { %v2503_v19 = vpop.f32.mrb[66].mxu0  ;;  %v1741_v56 = vadd.f32 %v2139_v24, %v1740_v49 }
 0x6cd   :  { %v1752_v47 = vadd.f32 %v2503_v19, %v2139_v24  ;;  %v1743_v61 = vpop.f32.mrb[67].mxu0  ;;  %v2640_v19 = vpop.eup %2639 }
 0x6ce   :  { %v1744_v26 = vadd.f32 %v2139_v24, %v1743_v61 }
 0x6cf   :  { %v1804_v53 = vpack.c.bf16 %v1752_v47, %v1749_v13  ;;  %v2665_v47 = vld [vmem:[%s3861_s0 + $0x10] sm:$0xff] }
 0x6d0   :  { %v1803_v15 = vpack.c.bf16 %v1744_v26, %v1741_v56  ;;  %v1990_v61 = vmul.f32 0.5, %v2665_v47  ;;  %v3800_v26 = vpop.xlane.xlu0 %985 }
 0x6d1   :  { %v1921_v14 = vmax.f32 %v3800_v26, 1.0 }
 0x6d2   :  { %v2506_v60 = vpop.f32.mrb[68].mxu0  ;;  %2516 = vmatprep.subr.bf16.mxu1 %v1803_v15 }
 0x6d3   :  { %v1756_v21 = vpop.f32.mrb[69].mxu0  ;;  %2517 = vmatpush3.bf16.msra.mxu1 %v1803_v15  ;;  %v1765_v2 = vadd.f32 %v2506_v60, %v2139_v24 }
 0x6d4   :  { %v2507_v27 = vpop.f32.mrb[70].mxu0  ;;  %2518 = vmatprep.subr.bf16.mxu1 %v1804_v53  ;;  %v1757_v48 = vadd.f32 %v2139_v24, %v1756_v21 }
 0x6d5   :  { %v1768_v23 = vadd.f32 %v2507_v27, %v2139_v24  ;;  %v1759_v58 = vpop.f32.mrb[71].mxu0  ;;  %v1919_v27 = vmax.f32 %v982_v12, 1.0 }
 0x6d6   :  { %v1760_v25 = vadd.f32 %v2139_v24, %v1759_v58 }
 0x6d7   :  { %v1806_v50 = vpack.c.bf16 %v1768_v23, %v1765_v2  ;;  %2519 = vmatpush3.bf16.msra.mxu1 %v1804_v53  ;;  %v2666_v53 = vld [vmem:[%s3861_s0] sm:$0xff]  ;;  %v1916_v23 = vmax.f32 %v976_v11, 1.0 }
 0x6d8   :  { %v1805_v45 = vpack.c.bf16 %v1760_v25, %v1757_v48  ;;  %v1988_v15 = vmul.f32 0.5, %v2666_v53  ;;  %v2667_v48 = vld [vmem:[%s3861_s0 + $0x18] sm:$0xff] }
 0x6d9   :  { %v1991_v25 = vmul.f32 0.5, %v2667_v48 }
 0x6da   :  { %v2510_v30 = vpop.f32.mrb[72].mxu0  ;;  %2520 = vmatprep.subr.bf16.mxu1 %v1805_v45 }
 0x6db   :  { %v1772_v32 = vpop.f32.mrb[73].mxu0  ;;  %2521 = vmatpush3.bf16.msra.mxu1 %v1805_v45  ;;  %v1781_v4 = vadd.f32 %v2510_v30, %v2139_v24  ;;  %v2668_v45 = vld [vmem:[%s3861_s0 + $0x8] sm:$0xff] }
 0x6dc   :  { %v2511_v33 = vpop.f32.mrb[74].mxu0  ;;  %2522 = vmatprep.subr.bf16.mxu1 %v1806_v50  ;;  %v1773_v31 = vadd.f32 %v2139_v24, %v1772_v32  ;;  %v1989_v30 = vmul.f32 0.5, %v2668_v45 }
 0x6dd   :  { %v1784_v51 = vadd.f32 %v2511_v33, %v2139_v24  ;;  %v1775_v62 = vpop.f32.mrb[75].mxu0 }
 0x6de   :  { %v1776_v59 = vadd.f32 %v2139_v24, %v1775_v62 }
 0x6df   :  { %v1808_v37 = vpack.c.bf16 %v1784_v51, %v1781_v4  ;;  %2523 = vmatpush3.bf16.msra.mxu1 %v1806_v50  ;;  %v1917_v51 = vmax.f32 %v978_v44, 1.0 }
 0x6e0   :  { %v1807_v63 = vpack.c.bf16 %v1776_v59, %v1773_v31  ;;  %v2642_v59 = vpop.eup %2641 }
 0x6e2   :  { %v2514_v55 = vpop.f32.mrb[76].mxu0  ;;  %2524 = vmatprep.subr.bf16.mxu1 %v1807_v63 }
 0x6e3   :  { %v1788_v38 = vpop.f32.mrb[77].mxu0  ;;  %2525 = vmatpush3.bf16.msra.mxu1 %v1807_v63  ;;  %v1797_v41 = vadd.f32 %v2514_v55, %v2139_v24 }
 0x6e4   :  { %v2515_v36 = vpop.f32.mrb[78].mxu0  ;;  %2526 = vmatprep.subr.bf16.mxu1 %v1808_v37  ;;  %v1789_v54 = vadd.f32 %v2139_v24, %v1788_v38  ;;  %v990_v38 = vpop.xlane.xlu0 %989 }
 0x6e5   :  { %v1800_v43 = vadd.f32 %v2515_v36, %v2139_v24  ;;  %v1791_v34 = vpop.f32.mrb[79].mxu0  ;;  %v2644_v36 = vpop.eup %2643  ;;  %v1923_v35 = vmax.f32 %v990_v38, 1.0 }
 0x6e6   :  { %v1792_v10 = vadd.f32 %v2139_v24, %v1791_v34 }
 0x6e7   :  { %v1810_v40 = vpack.c.bf16 %v1800_v43, %v1797_v41  ;;  %2527 = vmatpush3.bf16.msra.mxu1 %v1808_v37 }
 0x6e8   :  { %v1809_v46 = vpack.c.bf16 %v1792_v10, %v1789_v54  ;;  %v2646_v54 = vpop.eup %2645 }
 0x6e9   :  { %v2648_v28 = vpop.eup %2647 }
 0x6ea   :  { %2528 = vmatprep.subr.bf16.mxu1 %v1809_v46 }
 0x6eb   :  { %2529 = vmatpush3.bf16.msra.mxu1 %v1809_v46 }
 0x6ec   :  { %2530 = vmatprep.subr.bf16.mxu1 %v1810_v40 }
 0x6ef   :  { %2531 = vmatpush3.bf16.msra.mxu1 %v1810_v40  ;;  %v2669_v40 = vld [vmem:[%s3861_s0 + $0x30] sm:$0xff] }
 0x6f0   :  { %v1994_v46 = vmul.f32 0.5, %v2669_v40 }
 0x6f2   :  { %2533 = vmatmul.mubr.msk.bf16.vlgmr.msra.gmra.mrb[64].mxu1 %vm2150_vm8, %v3917_v1 }
 0x6f3   :  { %2536 = vmatprep.mubr.msk.bf16.mxu1 %vm3625_vm0, %v3917_v1 }
 0x6fa   :  { %2537 = vmatmul.mubr.msk.bf16.gmra.mrb[68].mxu1 %vm3639_vm9, %v3917_v1 }
 0x6fb   :  { %2540 = vmatprep.mubr.msk.bf16.mxu1 %vm3653_vm6, %v3917_v1 }
 0x702   :  { %2541 = vmatmul.mubr.msk.bf16.gmra.mrb[72].mxu1 %vm3667_vm11, %v3917_v1 }
 0x703   :  { %2544 = vmatprep.mubr.msk.bf16.mxu1 %vm3681_vm5, %v3917_v1 }
 0x70a   :  { %2545 = vmatmul.mubr.msk.bf16.gmra.mrb[76].mxu1 %vm3695_vm4, %v3917_v1  ;;  %v980_v1 = vpop.xlane.xlu1 %979 }
 0x70b   :  { %v1918_v49 = vmax.f32 %v980_v1, 1.0  ;;  %v2672_v1 = vld [vmem:[%s3861_s0 + $0x28] sm:$0xff] }
 0x70c   :  { %v1993_v0 = vmul.f32 0.5, %v2672_v1 }
 0x70d   :  { %2649 = vrcp.f32 %v1918_v49 }
 0x70e   :  { %v3795_v22 = vpop.xlane.xlu1 %983  ;;  %2651 = vrcp.f32 %v1919_v27 }
 0x70f   :  { %2653 = vrcp.f32 %v1916_v23  ;;  %v1920_v39 = vmax.f32 %v3795_v22, 1.0 }
 0x710   :  { %2655 = vrcp.f32 %v1917_v51 }
 0x712   :  { %v988_v31 = vpop.xlane.xlu1 %987 }
 0x713   :  { %v1922_v34 = vmax.f32 %v988_v31, 1.0 }
 0x715   :  { %2657 = vrcp.f32 %v1922_v34 }
 0x716   :  { %2659 = vrcp.f32 %v1923_v35 }
 0x717   :  { %2661 = vrcp.f32 %v1920_v39 }
 0x718   :  { %2663 = vrcp.f32 %v1921_v14 }
 0x7c5   :  { %v2534_v24 = vpop.f32.mrb[64].mxu1 }
 0x7c6   :  { %v1958_v13 = vmul.f32 %v2634_v16, %v2534_v24  ;;  %v1845_v56 = vpop.f32.mrb[65].mxu1  ;;  %v2650_v16 = vpop.eup %2649 }
 0x7c7   :  { %v1956_v60 = vmul.f32 %v2636_v17, %v1845_v56  ;;  %v2535_v21 = vpop.f32.mrb[66].mxu1  ;;  %v2652_v22 = vpop.eup %2651 }
 0x7c8   :  { %v1974_v2 = vmul.f32 0.5, %v1958_v13  ;;  %v1959_v58 = vmul.f32 %v2638_v20, %v2535_v21  ;;  %v1848_v50 = vpop.f32.mrb[67].mxu1  ;;  %v2654_v13 = vpop.eup %2653 }
 0x7c9   :  { %v1972_v32 = vmul.f32 0.5, %v1956_v60  ;;  %v1957_v33 = vmul.f32 %v2640_v19, %v1848_v50  ;;  %v2656_v27 = vpop.eup %2655 }
 0x7ca   :  { %v2006_v4 = vadd.f32 %v1990_v61, %v1974_v2  ;;  %v1975_v62 = vmul.f32 0.5, %v1959_v58  ;;  %v2673_v61 = vld [vmem:[%s3861_s0 + $0x50] sm:$0xff]  ;;  %v2675_v58 = vld [vmem:[%s3861_s0 + $0x58] sm:$0xff]  ;;  %v2658_v51 = vpop.eup %2657 }
 0x7cb   :  { %v2004_v37 = vadd.f32 %v1988_v15, %v1972_v32  ;;  %v1973_v63 = vmul.f32 0.5, %v1957_v33  ;;  %v1998_v56 = vmul.f32 0.5, %v2673_v61  ;;  %v2674_v15 = vld [vmem:[%s3861_s0 + $0x40] sm:$0xff]  ;;  %v1999_v48 = vmul.f32 0.5, %v2675_v58 }
 0x7cc   :  { %2022 = vst [vmem:[#allocation8 + $0x10] sm:$0xff] %v2006_v4  ;;  %v2007_v55 = vadd.f32 %v1991_v25, %v1975_v62  ;;  %v1996_v60 = vmul.f32 0.5, %v2674_v15 }
 0x7cd   :  { %2020 = vst [vmem:[#allocation8] sm:$0xff] %v2004_v37  ;;  %v2005_v41 = vadd.f32 %v1989_v30, %v1973_v63  ;;  %v2538_v43 = vpop.f32.mrb[68].mxu1  ;;  %v2676_v30 = vld [vmem:[%s3861_s0 + $0x48] sm:$0xff]  ;;  %v2660_v37 = vpop.eup %2659 }
 0x7ce   :  { %2023 = vst [vmem:[#allocation8 + $0x18] sm:$0xff] %v2007_v55  ;;  %v1962_v10 = vmul.f32 %v2642_v59, %v2538_v43  ;;  %v1861_v6 = vpop.f32.mrb[69].mxu1  ;;  %v1997_v32 = vmul.f32 0.5, %v2676_v30  ;;  %v2662_v38 = vpop.eup %2661 }
 0x7cf   :  { %2021 = vst [vmem:[#allocation8 + $0x8] sm:$0xff] %v2005_v41  ;;  %v1960_v18 = vmul.f32 %v2646_v54, %v1861_v6  ;;  %v2539_v3 = vpop.f32.mrb[70].mxu1  ;;  %v2677_v41 = vld [vmem:[%s3861_s0 + $0x70] sm:$0xff]  ;;  %v2664_v6 = vpop.eup %2663 }
 0x7d0   :  { %v1978_v5 = vmul.f32 0.5, %v1962_v10  ;;  %v1963_v57 = vmul.f32 %v2644_v36, %v2539_v3  ;;  %v1864_v11 = vpop.f32.mrb[71].mxu1  ;;  %v2002_v43 = vmul.f32 0.5, %v2677_v41  ;;  %v2678_v10 = vld [vmem:[%s3861_s0 + $0x60] sm:$0xff] }
 0x7d1   :  { %v1976_v44 = vmul.f32 0.5, %v1960_v18  ;;  %v1961_v42 = vmul.f32 %v2648_v28, %v1864_v11  ;;  %v2000_v40 = vmul.f32 0.5, %v2678_v10 }
 0x7d2   :  { %v2010_v9 = vadd.f32 %v1994_v46, %v1978_v5  ;;  %v1979_v12 = vmul.f32 0.5, %v1963_v57  ;;  %v2680_v57 = vld [vmem:[%s3861_s0 + $0x68] sm:$0xff] }
 0x7d3   :  { %v2008_v17 = vadd.f32 %v1992_v29, %v1976_v44  ;;  %v1977_v20 = vmul.f32 0.5, %v1961_v42  ;;  %v2679_v29 = vld [vmem:[%s3861_s0 + $0x78] sm:$0xff]  ;;  %v2001_v7 = vmul.f32 0.5, %v2680_v57 }
 0x7d4   :  { %2026 = vst [vmem:[#allocation8 + $0x30] sm:$0xff] %v2010_v9  ;;  %v2011_v24 = vadd.f32 %v1995_v52, %v1979_v12  ;;  %v2003_v3 = vmul.f32 0.5, %v2679_v29 }
 0x7d5   :  { %2024 = vst [vmem:[#allocation8 + $0x20] sm:$0xff] %v2008_v17  ;;  %v2009_v49 = vadd.f32 %v1993_v0, %v1977_v20  ;;  %v2542_v19 = vpop.f32.mrb[72].mxu1 }
 0x7d6   :  { %2027 = vst [vmem:[#allocation8 + $0x38] sm:$0xff] %v2011_v24  ;;  %v1966_v47 = vmul.f32 %v2650_v16, %v2542_v19  ;;  %v1877_v26 = vpop.f32.mrb[73].mxu1 }
 0x7d7   :  { %2025 = vst [vmem:[#allocation8 + $0x28] sm:$0xff] %v2009_v49  ;;  %v1964_v53 = vmul.f32 %v2654_v13, %v1877_v26  ;;  %v2543_v21 = vpop.f32.mrb[74].mxu1 }
 0x7d8   :  { %v1982_v2 = vmul.f32 0.5, %v1966_v47  ;;  %v1967_v23 = vmul.f32 %v2652_v22, %v2543_v21  ;;  %v1880_v25 = vpop.f32.mrb[75].mxu1 }
 0x7d9   :  { %v1980_v50 = vmul.f32 0.5, %v1964_v53  ;;  %v1965_v45 = vmul.f32 %v2656_v27, %v1880_v25 }
 0x7da   :  { %v2014_v33 = vadd.f32 %v1998_v56, %v1982_v2  ;;  %v1983_v4 = vmul.f32 0.5, %v1967_v23 }
 0x7db   :  { %v2012_v62 = vadd.f32 %v1996_v60, %v1980_v50  ;;  %v1981_v31 = vmul.f32 0.5, %v1965_v45 }
 0x7dc   :  { %2030 = vst [vmem:[#allocation8 + $0x50] sm:$0xff] %v2014_v33  ;;  %v2015_v59 = vadd.f32 %v1999_v48, %v1983_v4 }
 0x7dd   :  { %2028 = vst [vmem:[#allocation8 + $0x40] sm:$0xff] %v2012_v62  ;;  %v2013_v63 = vadd.f32 %v1997_v32, %v1981_v31  ;;  %v2546_v55 = vpop.f32.mrb[76].mxu1 }
 0x7de   :  { %2031 = vst [vmem:[#allocation8 + $0x58] sm:$0xff] %v2015_v59  ;;  %v1970_v36 = vmul.f32 %v2658_v51, %v2546_v55  ;;  %v1893_v34 = vpop.f32.mrb[77].mxu1 }
 0x7df   :  { %2029 = vst [vmem:[#allocation8 + $0x48] sm:$0xff] %v2013_v63  ;;  %v1968_v54 = vmul.f32 %v2662_v38, %v1893_v34  ;;  %v2547_v46 = vpop.f32.mrb[78].mxu1 }
 0x7e0   :  { %v1986_v18 = vmul.f32 0.5, %v1970_v36  ;;  %v1971_v8 = vmul.f32 %v2660_v37, %v2547_v46  ;;  %v1896_v35 = vpop.f32.mrb[79].mxu1 }
 0x7e1   :  { %v1984_v28 = vmul.f32 0.5, %v1968_v54  ;;  %v1969_v5 = vmul.f32 %v2664_v6, %v1896_v35 }
 0x7e2   :  { %v2018_v52 = vadd.f32 %v2002_v43, %v1986_v18  ;;  %v1987_v39 = vmul.f32 0.5, %v1971_v8 }
 0x7e3   :  { %v2016_v11 = vadd.f32 %v2000_v40, %v1984_v28  ;;  %v1985_v44 = vmul.f32 0.5, %v1969_v5 }
 0x7e4   :  { %2034 = vst [vmem:[#allocation8 + $0x70] sm:$0xff] %v2018_v52  ;;  %v2019_v42 = vadd.f32 %v2003_v3, %v1987_v39 }
 0x7e5   :  { %2032 = vst [vmem:[#allocation8 + $0x60] sm:$0xff] %v2016_v11  ;;  %v2017_v1 = vadd.f32 %v2001_v7, %v1985_v44 }
 0x7e6   :  { %2035 = vst [vmem:[#allocation8 + $0x78] sm:$0xff] %v2019_v42 }
 0x7e7   :  { %2033 = vst [vmem:[#allocation8 + $0x68] sm:$0xff] %v2017_v1 }
 0x7e8   :  { %2758 = shalt.err (!%p2755_p0)
}
 0x7e9   :  { %s2759_s19 = scalar_lea.hbm %s3875_s14, 2048 }
 0x7ea   :  { %p2760_p1 = scmp.ne.s32.totalorder %s3875_s14, %s2759_s19  ;;  %p2763_p2 = scmp.lt.u32.totalorder %s2759_s19, %s3875_s14 }
 0x7ec   :  { %p2765_p3 = pnand %p2763_p2, %p2760_p1 }
 0x7ee   :  { %2768 = shalt.err (!%p2765_p3)
}
 0x7ef   :  { %s2784_s16 = smov 128   ;;  %s2785_s21 = smov 8  }
 0x7f0   :  { %2047 = dma.vmem_to_hbm [thread:$0]  %s2042_s15, 2048, %s3875_s14, [#allocation4], %s2784_s16, %s2784_s16, %s2785_s21  }
 0x7f1   :  { %2773 = dma.done.wait [#allocation4], 2048  }
 0x7f2   :  { %2774 = vsyncadd [#allocation4], 4294965248 }
 0x7f3   :  { %2051 = vsyncpa [#allocation3], 1 }
 0x7f4   :  { %2052 = vsyncpa [#allocation6], 1 }
 0x7f5   :  { %2053 = vsyncpa [#allocation4], 1 }

</bundles_post_ra>
